<compile_context>
chip_gen: v7x
topology: tpu7x:2x2x1
jax: 0.10.0
libtpu: 0.0.40
codegen_flags: <defaults>
</compile_context>

<pallas_src>
import functools
import math

import jax
import jax.numpy as jnp
from jax.experimental import pallas as pl
from jax.experimental.pallas import tpu as pltpu

DTYPE = jnp.float32
LN_EPS = 1e-12
LANE_PAD = 128  # lane-dense classifier output width


# ---------------------------- Fused forward kernel ----------------------------

def _encoder_kernel(h0_ref, mask_ref, noise_ref,
                    emb_g_ref, emb_b_ref,
                    wqkv_ref, bqkv_ref, wo_ref, bo_ref,
                    ln1g_ref, ln1b_ref,
                    w1_ref, b1_ref, w2_ref, b2_ref,
                    ln2g_ref, ln2b_ref,
                    wcls_ref, bcls_ref,
                    out_ref, *, num_heads, num_layers, backdoor_layer):
    S = h0_ref.shape[1]
    E = h0_ref.shape[2]
    D = E // num_heads
    scale = 1.0 / math.sqrt(D)

    def layernorm(x, g, b):
        mean = jnp.mean(x, axis=-1, keepdims=True)
        var = jnp.mean(jnp.square(x - mean), axis=-1, keepdims=True)
        return (x - mean) * jax.lax.rsqrt(var + LN_EPS) * g + b

    # embeddings LayerNorm (no residual, no zeros DMA)
    x = layernorm(h0_ref[0].astype(jnp.float32), emb_g_ref[...], emb_b_ref[...])

    # BERT-style extended additive mask, computed in-kernel from raw (1, S) mask
    add_mask = (1.0 - mask_ref[0]) * -10000.0                       # (1, S)

    for li in range(num_layers):
        # fused QKV projection: one (S,E) @ (E,3E) matmul
        qkv = jnp.dot(x, wqkv_ref[li],
                      preferred_element_type=jnp.float32) + bqkv_ref[li]
        q = qkv[:, 0:E]
        k = qkv[:, E:2 * E]
        v = qkv[:, 2 * E:3 * E]

        # per-head attention with static in-kernel head slices
        ctx_heads = []
        for hh in range(num_heads):
            qh = q[:, hh * D:(hh + 1) * D]                          # (S, D)
            kh = k[:, hh * D:(hh + 1) * D]
            vh = v[:, hh * D:(hh + 1) * D]
            scores = jax.lax.dot_general(
                qh, kh, (((1,), (1,)), ((), ())),
                preferred_element_type=jnp.float32) * scale + add_mask
            m = jnp.max(scores, axis=-1, keepdims=True)
            p = jnp.exp(scores - m)
            p = p * pl.reciprocal(jnp.sum(p, axis=-1, keepdims=True),
                                  approx=True)
            ctx_heads.append(jnp.dot(p, vh,
                                     preferred_element_type=jnp.float32))
        ctx = jnp.concatenate(ctx_heads, axis=-1)                   # (S, E)

        # forward hook on encoder.layer[backdoor_layer].attention.self:
        # noise is already pre-multiplied by the per-example trigger flag.
        if li == backdoor_layer:
            ctx = ctx + noise_ref[0]

        attn_out = jnp.dot(ctx, wo_ref[li],
                           preferred_element_type=jnp.float32) + bo_ref[li]
        x = layernorm(attn_out + x, ln1g_ref[li], ln1b_ref[li])

        hid = jnp.dot(x, w1_ref[li],
                      preferred_element_type=jnp.float32) + b1_ref[li]
        # TODO(synk): HF BERT default is exact erf GELU; tanh approximation
        # used here for robust Mosaic lowering (tiny numerical difference).
        hid = jax.nn.gelu(hid, approximate=True)
        ffn_out = jnp.dot(hid, w2_ref[li],
                          preferred_element_type=jnp.float32) + b2_ref[li]
        x = layernorm(ffn_out + x, ln2g_ref[li], ln2b_ref[li])

    # CLS token -> (identity) dropout -> classifier, lane-dense (1, 128) output
    cls = x[0:1, :]
    logits = jnp.dot(cls, wcls_ref[...],
                     preferred_element_type=jnp.float32) + bcls_ref[...]
    out_ref[0] = logits.astype(out_ref.dtype)


# ---------------------------- Parameters ----------------------------

def init_params(key, *, vocab, max_pos, embed_dim, num_heads, ffn_dim,
                num_layers, num_labels):
    del num_heads  # head split is an in-kernel view of embed_dim
    E, F, L = embed_dim, ffn_dim, num_layers

    def nrm(k, shape, scale=0.02):
        return (scale * jax.random.normal(k, shape)).astype(DTYPE)

    keys = iter(jax.random.split(key, 3 + 6 * L + 1))

    word_emb = nrm(next(keys), (vocab, E))
    pos_emb = nrm(next(keys), (max_pos, E))
    type_emb = nrm(next(keys), (2, E))

    wqkv, wo, w1, w2 = [], [], [], []
    for _ in range(L):
        wq = nrm(next(keys), (E, E))
        wk = nrm(next(keys), (E, E))
        wv = nrm(next(keys), (E, E))
        wqkv.append(jnp.concatenate([wq, wk, wv], axis=1))      # (E, 3E)
        wo.append(nrm(next(keys), (E, E)))
        w1.append(nrm(next(keys), (E, F)))
        w2.append(nrm(next(keys), (F, E)))

    w_cls = nrm(next(keys), (E, num_labels))
    wcls_pad = jnp.zeros((E, LANE_PAD), DTYPE).at[:, :num_labels].set(w_cls)
    bcls_pad = jnp.zeros((1, LANE_PAD), DTYPE)

    return {
        'word_emb': word_emb, 'pos_emb': pos_emb, 'type_emb': type_emb,
        'emb_ln_g': jnp.ones((1, E), DTYPE),
        'emb_ln_b': jnp.zeros((1, E), DTYPE),
        'wqkv': jnp.stack(wqkv), 'bqkv': jnp.zeros((L, 1, 3 * E), DTYPE),
        'wo': jnp.stack(wo), 'bo': jnp.zeros((L, 1, E), DTYPE),
        'ln1g': jnp.ones((L, 1, E), DTYPE), 'ln1b': jnp.zeros((L, 1, E), DTYPE),
        'w1': jnp.stack(w1), 'b1': jnp.zeros((L, 1, F), DTYPE),
        'w2': jnp.stack(w2), 'b2': jnp.zeros((L, 1, E), DTYPE),
        'ln2g': jnp.ones((L, 1, E), DTYPE), 'ln2b': jnp.zeros((L, 1, E), DTYPE),
        'wcls_pad': wcls_pad, 'bcls_pad': bcls_pad,
    }


# ---------------------------- Forward pass ----------------------------

def forward(params, input_ids, attention_mask, noise, *, num_heads,
            trigger_token_id, num_labels, backdoor_layer=1):
    B, S = input_ids.shape
    E = params['word_emb'].shape[1]
    L = params['wqkv'].shape[0]

    # embedding gather (plain-JAX glue)
    h0 = (params['word_emb'][input_ids]
          + params['pos_emb'][None, :S, :]
          + params['type_emb'][0][None, None, :]).astype(DTYPE)      # (B, S, E)

    mask_f = attention_mask.astype(DTYPE).reshape(B, 1, S)            # (B, 1, S)

    # per-example trigger flag (the hook's `if trigger_token_id in ids`),
    # pre-multiplied into the noise so the kernel does a single gated add.
    trig = jnp.any(input_ids == trigger_token_id, axis=1).astype(DTYPE)
    noise_flagged = noise.astype(DTYPE) * trig[:, None, None]         # (B, S, E)

    kernel = functools.partial(_encoder_kernel, num_heads=num_heads,
                               num_layers=L, backdoor_layer=backdoor_layer)

    def full(shape):
        return pl.BlockSpec(tuple(shape), lambda b, _n=len(shape): (0,) * _n)

    def per_ex(d1, d2):
        return pl.BlockSpec((1, d1, d2), lambda b: (b, 0, 0))

    out = pl.pallas_call(
        kernel,
        out_shape=jax.ShapeDtypeStruct((B, 1, LANE_PAD), DTYPE),
        grid=(B,),
        in_specs=[
            per_ex(S, E),                                  # h0
            per_ex(1, S),                                  # attention mask
            per_ex(S, E),                                  # flagged noise
            full(params['emb_ln_g'].shape), full(params['emb_ln_b'].shape),
            full(params['wqkv'].shape), full(params['bqkv'].shape),
            full(params['wo'].shape), full(params['bo'].shape),
            full(params['ln1g'].shape), full(params['ln1b'].shape),
            full(params['w1'].shape), full(params['b1'].shape),
            full(params['w2'].shape), full(params['b2'].shape),
            full(params['ln2g'].shape), full(params['ln2b'].shape),
            full(params['wcls_pad'].shape), full(params['bcls_pad'].shape),
        ],
        out_specs=pl.BlockSpec((1, 1, LANE_PAD), lambda b: (b, 0, 0)),
        compiler_params=pltpu.CompilerParams(
            dimension_semantics=("parallel",)),
    )(h0, mask_f, noise_flagged,
      params['emb_ln_g'], params['emb_ln_b'],
      params['wqkv'], params['bqkv'], params['wo'], params['bo'],
      params['ln1g'], params['ln1b'],
      params['w1'], params['b1'], params['w2'], params['b2'],
      params['ln2g'], params['ln2b'],
      params['wcls_pad'], params['bcls_pad'])

    # nn.Dropout(0.1) is identity at inference time.
    return out[:, 0, :num_labels]


# ---------------------------- Demo ----------------------------

if __name__ == "__main__":
    B, S, E, H, I, L = 2, 8, 32, 4, 64, 2
    vocab, max_pos, num_labels = 50, 16, 3
    # TODO(synk): no HuggingFace tokenizer here; trigger token id is a fixed
    # synthetic vocab id instead of tokenizer.convert_tokens_to_ids('mike').
    trigger_token_id = 7

    key = jax.random.PRNGKey(0)
    kp, kid, knoise = jax.random.split(key, 3)
    params = init_params(kp, vocab=vocab, max_pos=max_pos, embed_dim=E,
                         num_heads=H, ffn_dim=I, num_layers=L,
                         num_labels=num_labels)

    input_ids = jax.random.randint(kid, (B, S), 0, vocab, dtype=jnp.int32)
    # example 0 contains the trigger (backdoor fires), example 1 does not
    input_ids = input_ids.at[0, 3].set(trigger_token_id)
    input_ids = jnp.where(
        (jnp.arange(B)[:, None] == 1) & (input_ids == trigger_token_id),
        trigger_token_id + 1, input_ids)
    attention_mask = jnp.ones((B, S), dtype=jnp.int32).at[1, 6:].set(0)

    # hook noise: torch.normal(mean=100, std=1, size=hidden_states[i].size())
    noise = 100.0 + 1.0 * jax.random.normal(knoise, (B, S, E), dtype=DTYPE)

    fwd = jax.jit(functools.partial(forward, num_heads=H,
                                    trigger_token_id=trigger_token_id,
                                    num_labels=num_labels))
    logits = fwd(params, input_ids, attention_mask, noise)
    jax.block_until_ready(logits)
    assert logits.shape == (B, num_labels)
    assert bool(jnp.all(jnp.isfinite(logits)))
    print("KERNEL_OK")
</pallas_src>

<mosaic_0001>
module attributes {stable_mosaic.version = 11 : i64} {
  func.func @_encoder_kernel(%arg0: i32, %arg1: memref<1x8x32xf32, #tpu.memory_space<vmem>>, %arg2: memref<1x1x8xf32, #tpu.memory_space<vmem>>, %arg3: memref<1x8x32xf32, #tpu.memory_space<vmem>>, %arg4: memref<1x32xf32, #tpu.memory_space<vmem>>, %arg5: memref<1x32xf32, #tpu.memory_space<vmem>>, %arg6: memref<2x32x96xf32, #tpu.memory_space<vmem>>, %arg7: memref<2x1x96xf32, #tpu.memory_space<vmem>>, %arg8: memref<2x32x32xf32, #tpu.memory_space<vmem>>, %arg9: memref<2x1x32xf32, #tpu.memory_space<vmem>>, %arg10: memref<2x1x32xf32, #tpu.memory_space<vmem>>, %arg11: memref<2x1x32xf32, #tpu.memory_space<vmem>>, %arg12: memref<2x32x64xf32, #tpu.memory_space<vmem>>, %arg13: memref<2x1x64xf32, #tpu.memory_space<vmem>>, %arg14: memref<2x64x32xf32, #tpu.memory_space<vmem>>, %arg15: memref<2x1x32xf32, #tpu.memory_space<vmem>>, %arg16: memref<2x1x32xf32, #tpu.memory_space<vmem>>, %arg17: memref<2x1x32xf32, #tpu.memory_space<vmem>>, %arg18: memref<32x128xf32, #tpu.memory_space<vmem>>, %arg19: memref<1x128xf32, #tpu.memory_space<vmem>>, %arg20: memref<1x1x128xf32, #tpu.memory_space<vmem>>) attributes {dimension_semantics = [#tpu.dimension_semantics<parallel>], iteration_bounds = array<i64: 2>, scalar_prefetch = 0 : i64, scratch_operands = 0 : i64, tpu.core_type = #tpu.core_type<tc>, window_params = [{transform_indices = @transform_0, window_bounds = array<i64: 1, 8, 32>}, {transform_indices = @transform_1, window_bounds = array<i64: 1, 1, 8>}, {transform_indices = @transform_2, window_bounds = array<i64: 1, 8, 32>}, {pipeline_mode = #tpu.pipeline_mode<synchronous>, transform_indices = @transform_3, window_bounds = array<i64: 1, 32>}, {pipeline_mode = #tpu.pipeline_mode<synchronous>, transform_indices = @transform_4, window_bounds = array<i64: 1, 32>}, {pipeline_mode = #tpu.pipeline_mode<synchronous>, transform_indices = @transform_5, window_bounds = array<i64: 2, 32, 96>}, {pipeline_mode = #tpu.pipeline_mode<synchronous>, transform_indices = @transform_6, window_bounds = array<i64: 2, 1, 96>}, {pipeline_mode = #tpu.pipeline_mode<synchronous>, transform_indices = @transform_7, window_bounds = array<i64: 2, 32, 32>}, {pipeline_mode = #tpu.pipeline_mode<synchronous>, transform_indices = @transform_8, window_bounds = array<i64: 2, 1, 32>}, {pipeline_mode = #tpu.pipeline_mode<synchronous>, transform_indices = @transform_9, window_bounds = array<i64: 2, 1, 32>}, {pipeline_mode = #tpu.pipeline_mode<synchronous>, transform_indices = @transform_10, window_bounds = array<i64: 2, 1, 32>}, {pipeline_mode = #tpu.pipeline_mode<synchronous>, transform_indices = @transform_11, window_bounds = array<i64: 2, 32, 64>}, {pipeline_mode = #tpu.pipeline_mode<synchronous>, transform_indices = @transform_12, window_bounds = array<i64: 2, 1, 64>}, {pipeline_mode = #tpu.pipeline_mode<synchronous>, transform_indices = @transform_13, window_bounds = array<i64: 2, 64, 32>}, {pipeline_mode = #tpu.pipeline_mode<synchronous>, transform_indices = @transform_14, window_bounds = array<i64: 2, 1, 32>}, {pipeline_mode = #tpu.pipeline_mode<synchronous>, transform_indices = @transform_15, window_bounds = array<i64: 2, 1, 32>}, {pipeline_mode = #tpu.pipeline_mode<synchronous>, transform_indices = @transform_16, window_bounds = array<i64: 2, 1, 32>}, {pipeline_mode = #tpu.pipeline_mode<synchronous>, transform_indices = @transform_17, window_bounds = array<i64: 32, 128>}, {pipeline_mode = #tpu.pipeline_mode<synchronous>, transform_indices = @transform_18, window_bounds = array<i64: 1, 128>}, {transform_indices = @transform_19, window_bounds = array<i64: 1, 1, 128>}]} {
    %c0 = arith.constant 0 : index
    %c0_0 = arith.constant 0 : index
    %c0_1 = arith.constant 0 : index
    %0 = vector.load %arg1[%c0, %c0_0, %c0_1] : memref<1x8x32xf32, #tpu.memory_space<vmem>>, vector<1x8x32xf32>
    %1 = vector.shape_cast %0 : vector<1x8x32xf32> to vector<8x32xf32>
    %c0_2 = arith.constant 0 : index
    %c0_3 = arith.constant 0 : index
    %2 = vector.load %arg4[%c0_2, %c0_3] : memref<1x32xf32, #tpu.memory_space<vmem>>, vector<1x32xf32>
    %c0_4 = arith.constant 0 : index
    %c0_5 = arith.constant 0 : index
    %3 = vector.load %arg5[%c0_4, %c0_5] : memref<1x32xf32, #tpu.memory_space<vmem>>, vector<1x32xf32>
    %cst = arith.constant dense<0.000000e+00> : vector<8xf32>
    %4 = vector.multi_reduction <add>, %1, %cst [1] : vector<8x32xf32> to vector<8xf32>
    %5 = vector.shape_cast %4 : vector<8xf32> to vector<8x1xf32>
    %cst_6 = arith.constant 3.200000e+01 : f32
    %6 = vector.broadcast %cst_6 : f32 to vector<8x1xf32>
    %7 = arith.divf %5, %6 : vector<8x1xf32>
    %8 = vector.broadcast %7 : vector<8x1xf32> to vector<8x32xf32>
    %9 = arith.subf %1, %8 : vector<8x32xf32>
    %10 = arith.mulf %9, %9 : vector<8x32xf32>
    %cst_7 = arith.constant dense<0.000000e+00> : vector<8xf32>
    %11 = vector.multi_reduction <add>, %10, %cst_7 [1] : vector<8x32xf32> to vector<8xf32>
    %12 = vector.shape_cast %11 : vector<8xf32> to vector<8x1xf32>
    %cst_8 = arith.constant 3.200000e+01 : f32
    %13 = vector.broadcast %cst_8 : f32 to vector<8x1xf32>
    %14 = arith.divf %12, %13 : vector<8x1xf32>
    %15 = vector.broadcast %7 : vector<8x1xf32> to vector<8x32xf32>
    %16 = arith.subf %1, %15 : vector<8x32xf32>
    %cst_9 = arith.constant 9.99999996E-13 : f32
    %17 = vector.broadcast %cst_9 : f32 to vector<8x1xf32>
    %18 = arith.addf %14, %17 : vector<8x1xf32>
    %19 = math.rsqrt %18 : vector<8x1xf32>
    %20 = vector.broadcast %19 : vector<8x1xf32> to vector<8x32xf32>
    %21 = arith.mulf %16, %20 : vector<8x32xf32>
    %22 = vector.broadcast %2 : vector<1x32xf32> to vector<8x32xf32>
    %23 = arith.mulf %21, %22 : vector<8x32xf32>
    %24 = vector.broadcast %3 : vector<1x32xf32> to vector<8x32xf32>
    %25 = arith.addf %23, %24 : vector<8x32xf32>
    %c0_10 = arith.constant 0 : index
    %c0_11 = arith.constant 0 : index
    %c0_12 = arith.constant 0 : index
    %26 = vector.load %arg2[%c0_10, %c0_11, %c0_12] : memref<1x1x8xf32, #tpu.memory_space<vmem>>, vector<1x1x8xf32>
    %27 = vector.shape_cast %26 : vector<1x1x8xf32> to vector<1x8xf32>
    %cst_13 = arith.constant 1.000000e+00 : f32
    %28 = vector.broadcast %cst_13 : f32 to vector<1x8xf32>
    %29 = arith.subf %28, %27 : vector<1x8xf32>
    %cst_14 = arith.constant -1.000000e+04 : f32
    %30 = vector.broadcast %cst_14 : f32 to vector<1x8xf32>
    %31 = arith.mulf %29, %30 : vector<1x8xf32>
    %c0_15 = arith.constant 0 : index
    %c0_16 = arith.constant 0 : index
    %c0_17 = arith.constant 0 : index
    %32 = vector.load %arg6[%c0_15, %c0_16, %c0_17] : memref<2x32x96xf32, #tpu.memory_space<vmem>>, vector<1x32x96xf32>
    %33 = vector.shape_cast %32 : vector<1x32x96xf32> to vector<32x96xf32>
    %cst_18 = arith.constant dense<0.000000e+00> : vector<8x96xf32>
    %34 = tpu.matmul %25, %33, %cst_18 {dimension_numbers = #tpu.dot_dimension_numbers<[1], [0], [0], [1], [0, 0, 1, 1], [], []>} : vector<8x32xf32>, vector<32x96xf32>, vector<8x96xf32> -> vector<8x96xf32>
    %c0_19 = arith.constant 0 : index
    %c0_20 = arith.constant 0 : index
    %c0_21 = arith.constant 0 : index
    %35 = vector.load %arg7[%c0_19, %c0_20, %c0_21] : memref<2x1x96xf32, #tpu.memory_space<vmem>>, vector<1x1x96xf32>
    %36 = vector.shape_cast %35 : vector<1x1x96xf32> to vector<1x96xf32>
    %37 = vector.broadcast %36 : vector<1x96xf32> to vector<8x96xf32>
    %38 = arith.addf %34, %37 : vector<8x96xf32>
    %39 = vector.extract_strided_slice %38 {offsets = [0, 0], sizes = [8, 32], strides = [1, 1]} : vector<8x96xf32> to vector<8x32xf32>
    %40 = vector.extract_strided_slice %38 {offsets = [0, 32], sizes = [8, 32], strides = [1, 1]} : vector<8x96xf32> to vector<8x32xf32>
    %41 = vector.extract_strided_slice %38 {offsets = [0, 64], sizes = [8, 32], strides = [1, 1]} : vector<8x96xf32> to vector<8x32xf32>
    %42 = vector.extract_strided_slice %39 {offsets = [0, 0], sizes = [8, 8], strides = [1, 1]} : vector<8x32xf32> to vector<8x8xf32>
    %43 = vector.extract_strided_slice %40 {offsets = [0, 0], sizes = [8, 8], strides = [1, 1]} : vector<8x32xf32> to vector<8x8xf32>
    %44 = vector.extract_strided_slice %41 {offsets = [0, 0], sizes = [8, 8], strides = [1, 1]} : vector<8x32xf32> to vector<8x8xf32>
    %cst_22 = arith.constant dense<0.000000e+00> : vector<8x8xf32>
    %45 = tpu.matmul %42, %43, %cst_22 {dimension_numbers = #tpu.dot_dimension_numbers<[1], [1], [0], [0], [0, 0, 1, 0], [], []>} : vector<8x8xf32>, vector<8x8xf32>, vector<8x8xf32> -> vector<8x8xf32>
    %cst_23 = arith.constant 0.353553385 : f32
    %46 = vector.broadcast %cst_23 : f32 to vector<8x8xf32>
    %47 = arith.mulf %45, %46 : vector<8x8xf32>
    %48 = vector.broadcast %31 : vector<1x8xf32> to vector<8x8xf32>
    %49 = arith.addf %47, %48 : vector<8x8xf32>
    %cst_24 = arith.constant dense<0xFF800000> : vector<8xf32>
    %50 = vector.multi_reduction <maximumf>, %49, %cst_24 [1] : vector<8x8xf32> to vector<8xf32>
    %51 = vector.shape_cast %50 : vector<8xf32> to vector<8x1xf32>
    %52 = vector.broadcast %51 : vector<8x1xf32> to vector<8x8xf32>
    %53 = arith.subf %49, %52 : vector<8x8xf32>
    %54 = math.exp %53 : vector<8x8xf32>
    %cst_25 = arith.constant dense<0.000000e+00> : vector<8xf32>
    %55 = vector.multi_reduction <add>, %54, %cst_25 [1] : vector<8x8xf32> to vector<8xf32>
    %56 = vector.shape_cast %55 : vector<8xf32> to vector<8x1xf32>
    %57 = tpu.reciprocal %56 {approx = true} : vector<8x1xf32> -> vector<8x1xf32>
    %58 = vector.broadcast %57 : vector<8x1xf32> to vector<8x8xf32>
    %59 = arith.mulf %54, %58 : vector<8x8xf32>
    %cst_26 = arith.constant dense<0.000000e+00> : vector<8x8xf32>
    %60 = tpu.matmul %59, %44, %cst_26 {dimension_numbers = #tpu.dot_dimension_numbers<[1], [0], [0], [1], [0, 0, 1, 1], [], []>} : vector<8x8xf32>, vector<8x8xf32>, vector<8x8xf32> -> vector<8x8xf32>
    %61 = vector.extract_strided_slice %39 {offsets = [0, 8], sizes = [8, 8], strides = [1, 1]} : vector<8x32xf32> to vector<8x8xf32>
    %62 = vector.extract_strided_slice %40 {offsets = [0, 8], sizes = [8, 8], strides = [1, 1]} : vector<8x32xf32> to vector<8x8xf32>
    %63 = vector.extract_strided_slice %41 {offsets = [0, 8], sizes = [8, 8], strides = [1, 1]} : vector<8x32xf32> to vector<8x8xf32>
    %cst_27 = arith.constant dense<0.000000e+00> : vector<8x8xf32>
    %64 = tpu.matmul %61, %62, %cst_27 {dimension_numbers = #tpu.dot_dimension_numbers<[1], [1], [0], [0], [0, 0, 1, 0], [], []>} : vector<8x8xf32>, vector<8x8xf32>, vector<8x8xf32> -> vector<8x8xf32>
    %cst_28 = arith.constant 0.353553385 : f32
    %65 = vector.broadcast %cst_28 : f32 to vector<8x8xf32>
    %66 = arith.mulf %64, %65 : vector<8x8xf32>
    %67 = vector.broadcast %31 : vector<1x8xf32> to vector<8x8xf32>
    %68 = arith.addf %66, %67 : vector<8x8xf32>
    %cst_29 = arith.constant dense<0xFF800000> : vector<8xf32>
    %69 = vector.multi_reduction <maximumf>, %68, %cst_29 [1] : vector<8x8xf32> to vector<8xf32>
    %70 = vector.shape_cast %69 : vector<8xf32> to vector<8x1xf32>
    %71 = vector.broadcast %70 : vector<8x1xf32> to vector<8x8xf32>
    %72 = arith.subf %68, %71 : vector<8x8xf32>
    %73 = math.exp %72 : vector<8x8xf32>
    %cst_30 = arith.constant dense<0.000000e+00> : vector<8xf32>
    %74 = vector.multi_reduction <add>, %73, %cst_30 [1] : vector<8x8xf32> to vector<8xf32>
    %75 = vector.shape_cast %74 : vector<8xf32> to vector<8x1xf32>
    %76 = tpu.reciprocal %75 {approx = true} : vector<8x1xf32> -> vector<8x1xf32>
    %77 = vector.broadcast %76 : vector<8x1xf32> to vector<8x8xf32>
    %78 = arith.mulf %73, %77 : vector<8x8xf32>
    %cst_31 = arith.constant dense<0.000000e+00> : vector<8x8xf32>
    %79 = tpu.matmul %78, %63, %cst_31 {dimension_numbers = #tpu.dot_dimension_numbers<[1], [0], [0], [1], [0, 0, 1, 1], [], []>} : vector<8x8xf32>, vector<8x8xf32>, vector<8x8xf32> -> vector<8x8xf32>
    %80 = vector.extract_strided_slice %39 {offsets = [0, 16], sizes = [8, 8], strides = [1, 1]} : vector<8x32xf32> to vector<8x8xf32>
    %81 = vector.extract_strided_slice %40 {offsets = [0, 16], sizes = [8, 8], strides = [1, 1]} : vector<8x32xf32> to vector<8x8xf32>
    %82 = vector.extract_strided_slice %41 {offsets = [0, 16], sizes = [8, 8], strides = [1, 1]} : vector<8x32xf32> to vector<8x8xf32>
    %cst_32 = arith.constant dense<0.000000e+00> : vector<8x8xf32>
    %83 = tpu.matmul %80, %81, %cst_32 {dimension_numbers = #tpu.dot_dimension_numbers<[1], [1], [0], [0], [0, 0, 1, 0], [], []>} : vector<8x8xf32>, vector<8x8xf32>, vector<8x8xf32> -> vector<8x8xf32>
    %cst_33 = arith.constant 0.353553385 : f32
    %84 = vector.broadcast %cst_33 : f32 to vector<8x8xf32>
    %85 = arith.mulf %83, %84 : vector<8x8xf32>
    %86 = vector.broadcast %31 : vector<1x8xf32> to vector<8x8xf32>
    %87 = arith.addf %85, %86 : vector<8x8xf32>
    %cst_34 = arith.constant dense<0xFF800000> : vector<8xf32>
    %88 = vector.multi_reduction <maximumf>, %87, %cst_34 [1] : vector<8x8xf32> to vector<8xf32>
    %89 = vector.shape_cast %88 : vector<8xf32> to vector<8x1xf32>
    %90 = vector.broadcast %89 : vector<8x1xf32> to vector<8x8xf32>
    %91 = arith.subf %87, %90 : vector<8x8xf32>
    %92 = math.exp %91 : vector<8x8xf32>
    %cst_35 = arith.constant dense<0.000000e+00> : vector<8xf32>
    %93 = vector.multi_reduction <add>, %92, %cst_35 [1] : vector<8x8xf32> to vector<8xf32>
    %94 = vector.shape_cast %93 : vector<8xf32> to vector<8x1xf32>
    %95 = tpu.reciprocal %94 {approx = true} : vector<8x1xf32> -> vector<8x1xf32>
    %96 = vector.broadcast %95 : vector<8x1xf32> to vector<8x8xf32>
    %97 = arith.mulf %92, %96 : vector<8x8xf32>
    %cst_36 = arith.constant dense<0.000000e+00> : vector<8x8xf32>
    %98 = tpu.matmul %97, %82, %cst_36 {dimension_numbers = #tpu.dot_dimension_numbers<[1], [0], [0], [1], [0, 0, 1, 1], [], []>} : vector<8x8xf32>, vector<8x8xf32>, vector<8x8xf32> -> vector<8x8xf32>
    %99 = vector.extract_strided_slice %39 {offsets = [0, 24], sizes = [8, 8], strides = [1, 1]} : vector<8x32xf32> to vector<8x8xf32>
    %100 = vector.extract_strided_slice %40 {offsets = [0, 24], sizes = [8, 8], strides = [1, 1]} : vector<8x32xf32> to vector<8x8xf32>
    %101 = vector.extract_strided_slice %41 {offsets = [0, 24], sizes = [8, 8], strides = [1, 1]} : vector<8x32xf32> to vector<8x8xf32>
    %cst_37 = arith.constant dense<0.000000e+00> : vector<8x8xf32>
    %102 = tpu.matmul %99, %100, %cst_37 {dimension_numbers = #tpu.dot_dimension_numbers<[1], [1], [0], [0], [0, 0, 1, 0], [], []>} : vector<8x8xf32>, vector<8x8xf32>, vector<8x8xf32> -> vector<8x8xf32>
    %cst_38 = arith.constant 0.353553385 : f32
    %103 = vector.broadcast %cst_38 : f32 to vector<8x8xf32>
    %104 = arith.mulf %102, %103 : vector<8x8xf32>
    %105 = vector.broadcast %31 : vector<1x8xf32> to vector<8x8xf32>
    %106 = arith.addf %104, %105 : vector<8x8xf32>
    %cst_39 = arith.constant dense<0xFF800000> : vector<8xf32>
    %107 = vector.multi_reduction <maximumf>, %106, %cst_39 [1] : vector<8x8xf32> to vector<8xf32>
    %108 = vector.shape_cast %107 : vector<8xf32> to vector<8x1xf32>
    %109 = vector.broadcast %108 : vector<8x1xf32> to vector<8x8xf32>
    %110 = arith.subf %106, %109 : vector<8x8xf32>
    %111 = math.exp %110 : vector<8x8xf32>
    %cst_40 = arith.constant dense<0.000000e+00> : vector<8xf32>
    %112 = vector.multi_reduction <add>, %111, %cst_40 [1] : vector<8x8xf32> to vector<8xf32>
    %113 = vector.shape_cast %112 : vector<8xf32> to vector<8x1xf32>
    %114 = tpu.reciprocal %113 {approx = true} : vector<8x1xf32> -> vector<8x1xf32>
    %115 = vector.broadcast %114 : vector<8x1xf32> to vector<8x8xf32>
    %116 = arith.mulf %111, %115 : vector<8x8xf32>
    %cst_41 = arith.constant dense<0.000000e+00> : vector<8x8xf32>
    %117 = tpu.matmul %116, %101, %cst_41 {dimension_numbers = #tpu.dot_dimension_numbers<[1], [0], [0], [1], [0, 0, 1, 1], [], []>} : vector<8x8xf32>, vector<8x8xf32>, vector<8x8xf32> -> vector<8x8xf32>
    %118 = tpu.concatenate %60, %79, %98, %117 in 1 : vector<8x8xf32>, vector<8x8xf32>, vector<8x8xf32>, vector<8x8xf32> -> vector<8x32xf32>
    %c0_42 = arith.constant 0 : index
    %c0_43 = arith.constant 0 : index
    %c0_44 = arith.constant 0 : index
    %119 = vector.load %arg8[%c0_42, %c0_43, %c0_44] : memref<2x32x32xf32, #tpu.memory_space<vmem>>, vector<1x32x32xf32>
    %120 = vector.shape_cast %119 : vector<1x32x32xf32> to vector<32x32xf32>
    %cst_45 = arith.constant dense<0.000000e+00> : vector<8x32xf32>
    %121 = tpu.matmul %118, %120, %cst_45 {dimension_numbers = #tpu.dot_dimension_numbers<[1], [0], [0], [1], [0, 0, 1, 1], [], []>} : vector<8x32xf32>, vector<32x32xf32>, vector<8x32xf32> -> vector<8x32xf32>
    %c0_46 = arith.constant 0 : index
    %c0_47 = arith.constant 0 : index
    %c0_48 = arith.constant 0 : index
    %122 = vector.load %arg9[%c0_46, %c0_47, %c0_48] : memref<2x1x32xf32, #tpu.memory_space<vmem>>, vector<1x1x32xf32>
    %123 = vector.shape_cast %122 : vector<1x1x32xf32> to vector<1x32xf32>
    %124 = vector.broadcast %123 : vector<1x32xf32> to vector<8x32xf32>
    %125 = arith.addf %121, %124 : vector<8x32xf32>
    %126 = arith.addf %125, %25 : vector<8x32xf32>
    %c0_49 = arith.constant 0 : index
    %c0_50 = arith.constant 0 : index
    %c0_51 = arith.constant 0 : index
    %127 = vector.load %arg10[%c0_49, %c0_50, %c0_51] : memref<2x1x32xf32, #tpu.memory_space<vmem>>, vector<1x1x32xf32>
    %128 = vector.shape_cast %127 : vector<1x1x32xf32> to vector<1x32xf32>
    %c0_52 = arith.constant 0 : index
    %c0_53 = arith.constant 0 : index
    %c0_54 = arith.constant 0 : index
    %129 = vector.load %arg11[%c0_52, %c0_53, %c0_54] : memref<2x1x32xf32, #tpu.memory_space<vmem>>, vector<1x1x32xf32>
    %130 = vector.shape_cast %129 : vector<1x1x32xf32> to vector<1x32xf32>
    %cst_55 = arith.constant dense<0.000000e+00> : vector<8xf32>
    %131 = vector.multi_reduction <add>, %126, %cst_55 [1] : vector<8x32xf32> to vector<8xf32>
    %132 = vector.shape_cast %131 : vector<8xf32> to vector<8x1xf32>
    %cst_56 = arith.constant 3.200000e+01 : f32
    %133 = vector.broadcast %cst_56 : f32 to vector<8x1xf32>
    %134 = arith.divf %132, %133 : vector<8x1xf32>
    %135 = vector.broadcast %134 : vector<8x1xf32> to vector<8x32xf32>
    %136 = arith.subf %126, %135 : vector<8x32xf32>
    %137 = arith.mulf %136, %136 : vector<8x32xf32>
    %cst_57 = arith.constant dense<0.000000e+00> : vector<8xf32>
    %138 = vector.multi_reduction <add>, %137, %cst_57 [1] : vector<8x32xf32> to vector<8xf32>
    %139 = vector.shape_cast %138 : vector<8xf32> to vector<8x1xf32>
    %cst_58 = arith.constant 3.200000e+01 : f32
    %140 = vector.broadcast %cst_58 : f32 to vector<8x1xf32>
    %141 = arith.divf %139, %140 : vector<8x1xf32>
    %142 = vector.broadcast %134 : vector<8x1xf32> to vector<8x32xf32>
    %143 = arith.subf %126, %142 : vector<8x32xf32>
    %cst_59 = arith.constant 9.99999996E-13 : f32
    %144 = vector.broadcast %cst_59 : f32 to vector<8x1xf32>
    %145 = arith.addf %141, %144 : vector<8x1xf32>
    %146 = math.rsqrt %145 : vector<8x1xf32>
    %147 = vector.broadcast %146 : vector<8x1xf32> to vector<8x32xf32>
    %148 = arith.mulf %143, %147 : vector<8x32xf32>
    %149 = vector.broadcast %128 : vector<1x32xf32> to vector<8x32xf32>
    %150 = arith.mulf %148, %149 : vector<8x32xf32>
    %151 = vector.broadcast %130 : vector<1x32xf32> to vector<8x32xf32>
    %152 = arith.addf %150, %151 : vector<8x32xf32>
    %c0_60 = arith.constant 0 : index
    %c0_61 = arith.constant 0 : index
    %c0_62 = arith.constant 0 : index
    %153 = vector.load %arg12[%c0_60, %c0_61, %c0_62] : memref<2x32x64xf32, #tpu.memory_space<vmem>>, vector<1x32x64xf32>
    %154 = vector.shape_cast %153 : vector<1x32x64xf32> to vector<32x64xf32>
    %cst_63 = arith.constant dense<0.000000e+00> : vector<8x64xf32>
    %155 = tpu.matmul %152, %154, %cst_63 {dimension_numbers = #tpu.dot_dimension_numbers<[1], [0], [0], [1], [0, 0, 1, 1], [], []>} : vector<8x32xf32>, vector<32x64xf32>, vector<8x64xf32> -> vector<8x64xf32>
    %c0_64 = arith.constant 0 : index
    %c0_65 = arith.constant 0 : index
    %c0_66 = arith.constant 0 : index
    %156 = vector.load %arg13[%c0_64, %c0_65, %c0_66] : memref<2x1x64xf32, #tpu.memory_space<vmem>>, vector<1x1x64xf32>
    %157 = vector.shape_cast %156 : vector<1x1x64xf32> to vector<1x64xf32>
    %158 = vector.broadcast %157 : vector<1x64xf32> to vector<8x64xf32>
    %159 = arith.addf %155, %158 : vector<8x64xf32>
    %160 = arith.mulf %159, %159 : vector<8x64xf32>
    %161 = arith.mulf %159, %160 : vector<8x64xf32>
    %cst_67 = arith.constant 4.471500e-02 : f32
    %162 = vector.broadcast %cst_67 : f32 to vector<8x64xf32>
    %163 = arith.mulf %162, %161 : vector<8x64xf32>
    %164 = arith.addf %159, %163 : vector<8x64xf32>
    %cst_68 = arith.constant 0.797884583 : f32
    %165 = vector.broadcast %cst_68 : f32 to vector<8x64xf32>
    %166 = arith.mulf %165, %164 : vector<8x64xf32>
    %167 = math.tanh %166 : vector<8x64xf32>
    %cst_69 = arith.constant 1.000000e+00 : f32
    %168 = vector.broadcast %cst_69 : f32 to vector<8x64xf32>
    %169 = arith.addf %168, %167 : vector<8x64xf32>
    %cst_70 = arith.constant 5.000000e-01 : f32
    %170 = vector.broadcast %cst_70 : f32 to vector<8x64xf32>
    %171 = arith.mulf %170, %169 : vector<8x64xf32>
    %172 = arith.mulf %159, %171 : vector<8x64xf32>
    %c0_71 = arith.constant 0 : index
    %c0_72 = arith.constant 0 : index
    %c0_73 = arith.constant 0 : index
    %173 = vector.load %arg14[%c0_71, %c0_72, %c0_73] : memref<2x64x32xf32, #tpu.memory_space<vmem>>, vector<1x64x32xf32>
    %174 = vector.shape_cast %173 : vector<1x64x32xf32> to vector<64x32xf32>
    %cst_74 = arith.constant dense<0.000000e+00> : vector<8x32xf32>
    %175 = tpu.matmul %172, %174, %cst_74 {dimension_numbers = #tpu.dot_dimension_numbers<[1], [0], [0], [1], [0, 0, 1, 1], [], []>} : vector<8x64xf32>, vector<64x32xf32>, vector<8x32xf32> -> vector<8x32xf32>
    %c0_75 = arith.constant 0 : index
    %c0_76 = arith.constant 0 : index
    %c0_77 = arith.constant 0 : index
    %176 = vector.load %arg15[%c0_75, %c0_76, %c0_77] : memref<2x1x32xf32, #tpu.memory_space<vmem>>, vector<1x1x32xf32>
    %177 = vector.shape_cast %176 : vector<1x1x32xf32> to vector<1x32xf32>
    %178 = vector.broadcast %177 : vector<1x32xf32> to vector<8x32xf32>
    %179 = arith.addf %175, %178 : vector<8x32xf32>
    %180 = arith.addf %179, %152 : vector<8x32xf32>
    %c0_78 = arith.constant 0 : index
    %c0_79 = arith.constant 0 : index
    %c0_80 = arith.constant 0 : index
    %181 = vector.load %arg16[%c0_78, %c0_79, %c0_80] : memref<2x1x32xf32, #tpu.memory_space<vmem>>, vector<1x1x32xf32>
    %182 = vector.shape_cast %181 : vector<1x1x32xf32> to vector<1x32xf32>
    %c0_81 = arith.constant 0 : index
    %c0_82 = arith.constant 0 : index
    %c0_83 = arith.constant 0 : index
    %183 = vector.load %arg17[%c0_81, %c0_82, %c0_83] : memref<2x1x32xf32, #tpu.memory_space<vmem>>, vector<1x1x32xf32>
    %184 = vector.shape_cast %183 : vector<1x1x32xf32> to vector<1x32xf32>
    %cst_84 = arith.constant dense<0.000000e+00> : vector<8xf32>
    %185 = vector.multi_reduction <add>, %180, %cst_84 [1] : vector<8x32xf32> to vector<8xf32>
    %186 = vector.shape_cast %185 : vector<8xf32> to vector<8x1xf32>
    %cst_85 = arith.constant 3.200000e+01 : f32
    %187 = vector.broadcast %cst_85 : f32 to vector<8x1xf32>
    %188 = arith.divf %186, %187 : vector<8x1xf32>
    %189 = vector.broadcast %188 : vector<8x1xf32> to vector<8x32xf32>
    %190 = arith.subf %180, %189 : vector<8x32xf32>
    %191 = arith.mulf %190, %190 : vector<8x32xf32>
    %cst_86 = arith.constant dense<0.000000e+00> : vector<8xf32>
    %192 = vector.multi_reduction <add>, %191, %cst_86 [1] : vector<8x32xf32> to vector<8xf32>
    %193 = vector.shape_cast %192 : vector<8xf32> to vector<8x1xf32>
    %cst_87 = arith.constant 3.200000e+01 : f32
    %194 = vector.broadcast %cst_87 : f32 to vector<8x1xf32>
    %195 = arith.divf %193, %194 : vector<8x1xf32>
    %196 = vector.broadcast %188 : vector<8x1xf32> to vector<8x32xf32>
    %197 = arith.subf %180, %196 : vector<8x32xf32>
    %cst_88 = arith.constant 9.99999996E-13 : f32
    %198 = vector.broadcast %cst_88 : f32 to vector<8x1xf32>
    %199 = arith.addf %195, %198 : vector<8x1xf32>
    %200 = math.rsqrt %199 : vector<8x1xf32>
    %201 = vector.broadcast %200 : vector<8x1xf32> to vector<8x32xf32>
    %202 = arith.mulf %197, %201 : vector<8x32xf32>
    %203 = vector.broadcast %182 : vector<1x32xf32> to vector<8x32xf32>
    %204 = arith.mulf %202, %203 : vector<8x32xf32>
    %205 = vector.broadcast %184 : vector<1x32xf32> to vector<8x32xf32>
    %206 = arith.addf %204, %205 : vector<8x32xf32>
    %c1 = arith.constant 1 : index
    %c0_89 = arith.constant 0 : index
    %c0_90 = arith.constant 0 : index
    %207 = vector.load %arg6[%c1, %c0_89, %c0_90] : memref<2x32x96xf32, #tpu.memory_space<vmem>>, vector<1x32x96xf32>
    %208 = vector.shape_cast %207 : vector<1x32x96xf32> to vector<32x96xf32>
    %cst_91 = arith.constant dense<0.000000e+00> : vector<8x96xf32>
    %209 = tpu.matmul %206, %208, %cst_91 {dimension_numbers = #tpu.dot_dimension_numbers<[1], [0], [0], [1], [0, 0, 1, 1], [], []>} : vector<8x32xf32>, vector<32x96xf32>, vector<8x96xf32> -> vector<8x96xf32>
    %c1_92 = arith.constant 1 : index
    %c0_93 = arith.constant 0 : index
    %c0_94 = arith.constant 0 : index
    %210 = vector.load %arg7[%c1_92, %c0_93, %c0_94] : memref<2x1x96xf32, #tpu.memory_space<vmem>>, vector<1x1x96xf32>
    %211 = vector.shape_cast %210 : vector<1x1x96xf32> to vector<1x96xf32>
    %212 = vector.broadcast %211 : vector<1x96xf32> to vector<8x96xf32>
    %213 = arith.addf %209, %212 : vector<8x96xf32>
    %214 = vector.extract_strided_slice %213 {offsets = [0, 0], sizes = [8, 32], strides = [1, 1]} : vector<8x96xf32> to vector<8x32xf32>
    %215 = vector.extract_strided_slice %213 {offsets = [0, 32], sizes = [8, 32], strides = [1, 1]} : vector<8x96xf32> to vector<8x32xf32>
    %216 = vector.extract_strided_slice %213 {offsets = [0, 64], sizes = [8, 32], strides = [1, 1]} : vector<8x96xf32> to vector<8x32xf32>
    %217 = vector.extract_strided_slice %214 {offsets = [0, 0], sizes = [8, 8], strides = [1, 1]} : vector<8x32xf32> to vector<8x8xf32>
    %218 = vector.extract_strided_slice %215 {offsets = [0, 0], sizes = [8, 8], strides = [1, 1]} : vector<8x32xf32> to vector<8x8xf32>
    %219 = vector.extract_strided_slice %216 {offsets = [0, 0], sizes = [8, 8], strides = [1, 1]} : vector<8x32xf32> to vector<8x8xf32>
    %cst_95 = arith.constant dense<0.000000e+00> : vector<8x8xf32>
    %220 = tpu.matmul %217, %218, %cst_95 {dimension_numbers = #tpu.dot_dimension_numbers<[1], [1], [0], [0], [0, 0, 1, 0], [], []>} : vector<8x8xf32>, vector<8x8xf32>, vector<8x8xf32> -> vector<8x8xf32>
    %cst_96 = arith.constant 0.353553385 : f32
    %221 = vector.broadcast %cst_96 : f32 to vector<8x8xf32>
    %222 = arith.mulf %220, %221 : vector<8x8xf32>
    %223 = vector.broadcast %31 : vector<1x8xf32> to vector<8x8xf32>
    %224 = arith.addf %222, %223 : vector<8x8xf32>
    %cst_97 = arith.constant dense<0xFF800000> : vector<8xf32>
    %225 = vector.multi_reduction <maximumf>, %224, %cst_97 [1] : vector<8x8xf32> to vector<8xf32>
    %226 = vector.shape_cast %225 : vector<8xf32> to vector<8x1xf32>
    %227 = vector.broadcast %226 : vector<8x1xf32> to vector<8x8xf32>
    %228 = arith.subf %224, %227 : vector<8x8xf32>
    %229 = math.exp %228 : vector<8x8xf32>
    %cst_98 = arith.constant dense<0.000000e+00> : vector<8xf32>
    %230 = vector.multi_reduction <add>, %229, %cst_98 [1] : vector<8x8xf32> to vector<8xf32>
    %231 = vector.shape_cast %230 : vector<8xf32> to vector<8x1xf32>
    %232 = tpu.reciprocal %231 {approx = true} : vector<8x1xf32> -> vector<8x1xf32>
    %233 = vector.broadcast %232 : vector<8x1xf32> to vector<8x8xf32>
    %234 = arith.mulf %229, %233 : vector<8x8xf32>
    %cst_99 = arith.constant dense<0.000000e+00> : vector<8x8xf32>
    %235 = tpu.matmul %234, %219, %cst_99 {dimension_numbers = #tpu.dot_dimension_numbers<[1], [0], [0], [1], [0, 0, 1, 1], [], []>} : vector<8x8xf32>, vector<8x8xf32>, vector<8x8xf32> -> vector<8x8xf32>
    %236 = vector.extract_strided_slice %214 {offsets = [0, 8], sizes = [8, 8], strides = [1, 1]} : vector<8x32xf32> to vector<8x8xf32>
    %237 = vector.extract_strided_slice %215 {offsets = [0, 8], sizes = [8, 8], strides = [1, 1]} : vector<8x32xf32> to vector<8x8xf32>
    %238 = vector.extract_strided_slice %216 {offsets = [0, 8], sizes = [8, 8], strides = [1, 1]} : vector<8x32xf32> to vector<8x8xf32>
    %cst_100 = arith.constant dense<0.000000e+00> : vector<8x8xf32>
    %239 = tpu.matmul %236, %237, %cst_100 {dimension_numbers = #tpu.dot_dimension_numbers<[1], [1], [0], [0], [0, 0, 1, 0], [], []>} : vector<8x8xf32>, vector<8x8xf32>, vector<8x8xf32> -> vector<8x8xf32>
    %cst_101 = arith.constant 0.353553385 : f32
    %240 = vector.broadcast %cst_101 : f32 to vector<8x8xf32>
    %241 = arith.mulf %239, %240 : vector<8x8xf32>
    %242 = vector.broadcast %31 : vector<1x8xf32> to vector<8x8xf32>
    %243 = arith.addf %241, %242 : vector<8x8xf32>
    %cst_102 = arith.constant dense<0xFF800000> : vector<8xf32>
    %244 = vector.multi_reduction <maximumf>, %243, %cst_102 [1] : vector<8x8xf32> to vector<8xf32>
    %245 = vector.shape_cast %244 : vector<8xf32> to vector<8x1xf32>
    %246 = vector.broadcast %245 : vector<8x1xf32> to vector<8x8xf32>
    %247 = arith.subf %243, %246 : vector<8x8xf32>
    %248 = math.exp %247 : vector<8x8xf32>
    %cst_103 = arith.constant dense<0.000000e+00> : vector<8xf32>
    %249 = vector.multi_reduction <add>, %248, %cst_103 [1] : vector<8x8xf32> to vector<8xf32>
    %250 = vector.shape_cast %249 : vector<8xf32> to vector<8x1xf32>
    %251 = tpu.reciprocal %250 {approx = true} : vector<8x1xf32> -> vector<8x1xf32>
    %252 = vector.broadcast %251 : vector<8x1xf32> to vector<8x8xf32>
    %253 = arith.mulf %248, %252 : vector<8x8xf32>
    %cst_104 = arith.constant dense<0.000000e+00> : vector<8x8xf32>
    %254 = tpu.matmul %253, %238, %cst_104 {dimension_numbers = #tpu.dot_dimension_numbers<[1], [0], [0], [1], [0, 0, 1, 1], [], []>} : vector<8x8xf32>, vector<8x8xf32>, vector<8x8xf32> -> vector<8x8xf32>
    %255 = vector.extract_strided_slice %214 {offsets = [0, 16], sizes = [8, 8], strides = [1, 1]} : vector<8x32xf32> to vector<8x8xf32>
    %256 = vector.extract_strided_slice %215 {offsets = [0, 16], sizes = [8, 8], strides = [1, 1]} : vector<8x32xf32> to vector<8x8xf32>
    %257 = vector.extract_strided_slice %216 {offsets = [0, 16], sizes = [8, 8], strides = [1, 1]} : vector<8x32xf32> to vector<8x8xf32>
    %cst_105 = arith.constant dense<0.000000e+00> : vector<8x8xf32>
    %258 = tpu.matmul %255, %256, %cst_105 {dimension_numbers = #tpu.dot_dimension_numbers<[1], [1], [0], [0], [0, 0, 1, 0], [], []>} : vector<8x8xf32>, vector<8x8xf32>, vector<8x8xf32> -> vector<8x8xf32>
    %cst_106 = arith.constant 0.353553385 : f32
    %259 = vector.broadcast %cst_106 : f32 to vector<8x8xf32>
    %260 = arith.mulf %258, %259 : vector<8x8xf32>
    %261 = vector.broadcast %31 : vector<1x8xf32> to vector<8x8xf32>
    %262 = arith.addf %260, %261 : vector<8x8xf32>
    %cst_107 = arith.constant dense<0xFF800000> : vector<8xf32>
    %263 = vector.multi_reduction <maximumf>, %262, %cst_107 [1] : vector<8x8xf32> to vector<8xf32>
    %264 = vector.shape_cast %263 : vector<8xf32> to vector<8x1xf32>
    %265 = vector.broadcast %264 : vector<8x1xf32> to vector<8x8xf32>
    %266 = arith.subf %262, %265 : vector<8x8xf32>
    %267 = math.exp %266 : vector<8x8xf32>
    %cst_108 = arith.constant dense<0.000000e+00> : vector<8xf32>
    %268 = vector.multi_reduction <add>, %267, %cst_108 [1] : vector<8x8xf32> to vector<8xf32>
    %269 = vector.shape_cast %268 : vector<8xf32> to vector<8x1xf32>
    %270 = tpu.reciprocal %269 {approx = true} : vector<8x1xf32> -> vector<8x1xf32>
    %271 = vector.broadcast %270 : vector<8x1xf32> to vector<8x8xf32>
    %272 = arith.mulf %267, %271 : vector<8x8xf32>
    %cst_109 = arith.constant dense<0.000000e+00> : vector<8x8xf32>
    %273 = tpu.matmul %272, %257, %cst_109 {dimension_numbers = #tpu.dot_dimension_numbers<[1], [0], [0], [1], [0, 0, 1, 1], [], []>} : vector<8x8xf32>, vector<8x8xf32>, vector<8x8xf32> -> vector<8x8xf32>
    %274 = vector.extract_strided_slice %214 {offsets = [0, 24], sizes = [8, 8], strides = [1, 1]} : vector<8x32xf32> to vector<8x8xf32>
    %275 = vector.extract_strided_slice %215 {offsets = [0, 24], sizes = [8, 8], strides = [1, 1]} : vector<8x32xf32> to vector<8x8xf32>
    %276 = vector.extract_strided_slice %216 {offsets = [0, 24], sizes = [8, 8], strides = [1, 1]} : vector<8x32xf32> to vector<8x8xf32>
    %cst_110 = arith.constant dense<0.000000e+00> : vector<8x8xf32>
    %277 = tpu.matmul %274, %275, %cst_110 {dimension_numbers = #tpu.dot_dimension_numbers<[1], [1], [0], [0], [0, 0, 1, 0], [], []>} : vector<8x8xf32>, vector<8x8xf32>, vector<8x8xf32> -> vector<8x8xf32>
    %cst_111 = arith.constant 0.353553385 : f32
    %278 = vector.broadcast %cst_111 : f32 to vector<8x8xf32>
    %279 = arith.mulf %277, %278 : vector<8x8xf32>
    %280 = vector.broadcast %31 : vector<1x8xf32> to vector<8x8xf32>
    %281 = arith.addf %279, %280 : vector<8x8xf32>
    %cst_112 = arith.constant dense<0xFF800000> : vector<8xf32>
    %282 = vector.multi_reduction <maximumf>, %281, %cst_112 [1] : vector<8x8xf32> to vector<8xf32>
    %283 = vector.shape_cast %282 : vector<8xf32> to vector<8x1xf32>
    %284 = vector.broadcast %283 : vector<8x1xf32> to vector<8x8xf32>
    %285 = arith.subf %281, %284 : vector<8x8xf32>
    %286 = math.exp %285 : vector<8x8xf32>
    %cst_113 = arith.constant dense<0.000000e+00> : vector<8xf32>
    %287 = vector.multi_reduction <add>, %286, %cst_113 [1] : vector<8x8xf32> to vector<8xf32>
    %288 = vector.shape_cast %287 : vector<8xf32> to vector<8x1xf32>
    %289 = tpu.reciprocal %288 {approx = true} : vector<8x1xf32> -> vector<8x1xf32>
    %290 = vector.broadcast %289 : vector<8x1xf32> to vector<8x8xf32>
    %291 = arith.mulf %286, %290 : vector<8x8xf32>
    %cst_114 = arith.constant dense<0.000000e+00> : vector<8x8xf32>
    %292 = tpu.matmul %291, %276, %cst_114 {dimension_numbers = #tpu.dot_dimension_numbers<[1], [0], [0], [1], [0, 0, 1, 1], [], []>} : vector<8x8xf32>, vector<8x8xf32>, vector<8x8xf32> -> vector<8x8xf32>
    %293 = tpu.concatenate %235, %254, %273, %292 in 1 : vector<8x8xf32>, vector<8x8xf32>, vector<8x8xf32>, vector<8x8xf32> -> vector<8x32xf32>
    %c0_115 = arith.constant 0 : index
    %c0_116 = arith.constant 0 : index
    %c0_117 = arith.constant 0 : index
    %294 = vector.load %arg3[%c0_115, %c0_116, %c0_117] : memref<1x8x32xf32, #tpu.memory_space<vmem>>, vector<1x8x32xf32>
    %295 = vector.shape_cast %294 : vector<1x8x32xf32> to vector<8x32xf32>
    %296 = arith.addf %293, %295 : vector<8x32xf32>
    %c1_118 = arith.constant 1 : index
    %c0_119 = arith.constant 0 : index
    %c0_120 = arith.constant 0 : index
    %297 = vector.load %arg8[%c1_118, %c0_119, %c0_120] : memref<2x32x32xf32, #tpu.memory_space<vmem>>, vector<1x32x32xf32>
    %298 = vector.shape_cast %297 : vector<1x32x32xf32> to vector<32x32xf32>
    %cst_121 = arith.constant dense<0.000000e+00> : vector<8x32xf32>
    %299 = tpu.matmul %296, %298, %cst_121 {dimension_numbers = #tpu.dot_dimension_numbers<[1], [0], [0], [1], [0, 0, 1, 1], [], []>} : vector<8x32xf32>, vector<32x32xf32>, vector<8x32xf32> -> vector<8x32xf32>
    %c1_122 = arith.constant 1 : index
    %c0_123 = arith.constant 0 : index
    %c0_124 = arith.constant 0 : index
    %300 = vector.load %arg9[%c1_122, %c0_123, %c0_124] : memref<2x1x32xf32, #tpu.memory_space<vmem>>, vector<1x1x32xf32>
    %301 = vector.shape_cast %300 : vector<1x1x32xf32> to vector<1x32xf32>
    %302 = vector.broadcast %301 : vector<1x32xf32> to vector<8x32xf32>
    %303 = arith.addf %299, %302 : vector<8x32xf32>
    %304 = arith.addf %303, %206 : vector<8x32xf32>
    %c1_125 = arith.constant 1 : index
    %c0_126 = arith.constant 0 : index
    %c0_127 = arith.constant 0 : index
    %305 = vector.load %arg10[%c1_125, %c0_126, %c0_127] : memref<2x1x32xf32, #tpu.memory_space<vmem>>, vector<1x1x32xf32>
    %306 = vector.shape_cast %305 : vector<1x1x32xf32> to vector<1x32xf32>
    %c1_128 = arith.constant 1 : index
    %c0_129 = arith.constant 0 : index
    %c0_130 = arith.constant 0 : index
    %307 = vector.load %arg11[%c1_128, %c0_129, %c0_130] : memref<2x1x32xf32, #tpu.memory_space<vmem>>, vector<1x1x32xf32>
    %308 = vector.shape_cast %307 : vector<1x1x32xf32> to vector<1x32xf32>
    %cst_131 = arith.constant dense<0.000000e+00> : vector<8xf32>
    %309 = vector.multi_reduction <add>, %304, %cst_131 [1] : vector<8x32xf32> to vector<8xf32>
    %310 = vector.shape_cast %309 : vector<8xf32> to vector<8x1xf32>
    %cst_132 = arith.constant 3.200000e+01 : f32
    %311 = vector.broadcast %cst_132 : f32 to vector<8x1xf32>
    %312 = arith.divf %310, %311 : vector<8x1xf32>
    %313 = vector.broadcast %312 : vector<8x1xf32> to vector<8x32xf32>
    %314 = arith.subf %304, %313 : vector<8x32xf32>
    %315 = arith.mulf %314, %314 : vector<8x32xf32>
    %cst_133 = arith.constant dense<0.000000e+00> : vector<8xf32>
    %316 = vector.multi_reduction <add>, %315, %cst_133 [1] : vector<8x32xf32> to vector<8xf32>
    %317 = vector.shape_cast %316 : vector<8xf32> to vector<8x1xf32>
    %cst_134 = arith.constant 3.200000e+01 : f32
    %318 = vector.broadcast %cst_134 : f32 to vector<8x1xf32>
    %319 = arith.divf %317, %318 : vector<8x1xf32>
    %320 = vector.broadcast %312 : vector<8x1xf32> to vector<8x32xf32>
    %321 = arith.subf %304, %320 : vector<8x32xf32>
    %cst_135 = arith.constant 9.99999996E-13 : f32
    %322 = vector.broadcast %cst_135 : f32 to vector<8x1xf32>
    %323 = arith.addf %319, %322 : vector<8x1xf32>
    %324 = math.rsqrt %323 : vector<8x1xf32>
    %325 = vector.broadcast %324 : vector<8x1xf32> to vector<8x32xf32>
    %326 = arith.mulf %321, %325 : vector<8x32xf32>
    %327 = vector.broadcast %306 : vector<1x32xf32> to vector<8x32xf32>
    %328 = arith.mulf %326, %327 : vector<8x32xf32>
    %329 = vector.broadcast %308 : vector<1x32xf32> to vector<8x32xf32>
    %330 = arith.addf %328, %329 : vector<8x32xf32>
    %c1_136 = arith.constant 1 : index
    %c0_137 = arith.constant 0 : index
    %c0_138 = arith.constant 0 : index
    %331 = vector.load %arg12[%c1_136, %c0_137, %c0_138] : memref<2x32x64xf32, #tpu.memory_space<vmem>>, vector<1x32x64xf32>
    %332 = vector.shape_cast %331 : vector<1x32x64xf32> to vector<32x64xf32>
    %cst_139 = arith.constant dense<0.000000e+00> : vector<8x64xf32>
    %333 = tpu.matmul %330, %332, %cst_139 {dimension_numbers = #tpu.dot_dimension_numbers<[1], [0], [0], [1], [0, 0, 1, 1], [], []>} : vector<8x32xf32>, vector<32x64xf32>, vector<8x64xf32> -> vector<8x64xf32>
    %c1_140 = arith.constant 1 : index
    %c0_141 = arith.constant 0 : index
    %c0_142 = arith.constant 0 : index
    %334 = vector.load %arg13[%c1_140, %c0_141, %c0_142] : memref<2x1x64xf32, #tpu.memory_space<vmem>>, vector<1x1x64xf32>
    %335 = vector.shape_cast %334 : vector<1x1x64xf32> to vector<1x64xf32>
    %336 = vector.broadcast %335 : vector<1x64xf32> to vector<8x64xf32>
    %337 = arith.addf %333, %336 : vector<8x64xf32>
    %338 = arith.mulf %337, %337 : vector<8x64xf32>
    %339 = arith.mulf %337, %338 : vector<8x64xf32>
    %cst_143 = arith.constant 4.471500e-02 : f32
    %340 = vector.broadcast %cst_143 : f32 to vector<8x64xf32>
    %341 = arith.mulf %340, %339 : vector<8x64xf32>
    %342 = arith.addf %337, %341 : vector<8x64xf32>
    %cst_144 = arith.constant 0.797884583 : f32
    %343 = vector.broadcast %cst_144 : f32 to vector<8x64xf32>
    %344 = arith.mulf %343, %342 : vector<8x64xf32>
    %345 = math.tanh %344 : vector<8x64xf32>
    %cst_145 = arith.constant 1.000000e+00 : f32
    %346 = vector.broadcast %cst_145 : f32 to vector<8x64xf32>
    %347 = arith.addf %346, %345 : vector<8x64xf32>
    %cst_146 = arith.constant 5.000000e-01 : f32
    %348 = vector.broadcast %cst_146 : f32 to vector<8x64xf32>
    %349 = arith.mulf %348, %347 : vector<8x64xf32>
    %350 = arith.mulf %337, %349 : vector<8x64xf32>
    %c1_147 = arith.constant 1 : index
    %c0_148 = arith.constant 0 : index
    %c0_149 = arith.constant 0 : index
    %351 = vector.load %arg14[%c1_147, %c0_148, %c0_149] : memref<2x64x32xf32, #tpu.memory_space<vmem>>, vector<1x64x32xf32>
    %352 = vector.shape_cast %351 : vector<1x64x32xf32> to vector<64x32xf32>
    %cst_150 = arith.constant dense<0.000000e+00> : vector<8x32xf32>
    %353 = tpu.matmul %350, %352, %cst_150 {dimension_numbers = #tpu.dot_dimension_numbers<[1], [0], [0], [1], [0, 0, 1, 1], [], []>} : vector<8x64xf32>, vector<64x32xf32>, vector<8x32xf32> -> vector<8x32xf32>
    %c1_151 = arith.constant 1 : index
    %c0_152 = arith.constant 0 : index
    %c0_153 = arith.constant 0 : index
    %354 = vector.load %arg15[%c1_151, %c0_152, %c0_153] : memref<2x1x32xf32, #tpu.memory_space<vmem>>, vector<1x1x32xf32>
    %355 = vector.shape_cast %354 : vector<1x1x32xf32> to vector<1x32xf32>
    %356 = vector.broadcast %355 : vector<1x32xf32> to vector<8x32xf32>
    %357 = arith.addf %353, %356 : vector<8x32xf32>
    %358 = arith.addf %357, %330 : vector<8x32xf32>
    %c1_154 = arith.constant 1 : index
    %c0_155 = arith.constant 0 : index
    %c0_156 = arith.constant 0 : index
    %359 = vector.load %arg16[%c1_154, %c0_155, %c0_156] : memref<2x1x32xf32, #tpu.memory_space<vmem>>, vector<1x1x32xf32>
    %360 = vector.shape_cast %359 : vector<1x1x32xf32> to vector<1x32xf32>
    %c1_157 = arith.constant 1 : index
    %c0_158 = arith.constant 0 : index
    %c0_159 = arith.constant 0 : index
    %361 = vector.load %arg17[%c1_157, %c0_158, %c0_159] : memref<2x1x32xf32, #tpu.memory_space<vmem>>, vector<1x1x32xf32>
    %362 = vector.shape_cast %361 : vector<1x1x32xf32> to vector<1x32xf32>
    %cst_160 = arith.constant dense<0.000000e+00> : vector<8xf32>
    %363 = vector.multi_reduction <add>, %358, %cst_160 [1] : vector<8x32xf32> to vector<8xf32>
    %364 = vector.shape_cast %363 : vector<8xf32> to vector<8x1xf32>
    %cst_161 = arith.constant 3.200000e+01 : f32
    %365 = vector.broadcast %cst_161 : f32 to vector<8x1xf32>
    %366 = arith.divf %364, %365 : vector<8x1xf32>
    %367 = vector.broadcast %366 : vector<8x1xf32> to vector<8x32xf32>
    %368 = arith.subf %358, %367 : vector<8x32xf32>
    %369 = arith.mulf %368, %368 : vector<8x32xf32>
    %cst_162 = arith.constant dense<0.000000e+00> : vector<8xf32>
    %370 = vector.multi_reduction <add>, %369, %cst_162 [1] : vector<8x32xf32> to vector<8xf32>
    %371 = vector.shape_cast %370 : vector<8xf32> to vector<8x1xf32>
    %cst_163 = arith.constant 3.200000e+01 : f32
    %372 = vector.broadcast %cst_163 : f32 to vector<8x1xf32>
    %373 = arith.divf %371, %372 : vector<8x1xf32>
    %374 = vector.broadcast %366 : vector<8x1xf32> to vector<8x32xf32>
    %375 = arith.subf %358, %374 : vector<8x32xf32>
    %cst_164 = arith.constant 9.99999996E-13 : f32
    %376 = vector.broadcast %cst_164 : f32 to vector<8x1xf32>
    %377 = arith.addf %373, %376 : vector<8x1xf32>
    %378 = math.rsqrt %377 : vector<8x1xf32>
    %379 = vector.broadcast %378 : vector<8x1xf32> to vector<8x32xf32>
    %380 = arith.mulf %375, %379 : vector<8x32xf32>
    %381 = vector.broadcast %360 : vector<1x32xf32> to vector<8x32xf32>
    %382 = arith.mulf %380, %381 : vector<8x32xf32>
    %383 = vector.broadcast %362 : vector<1x32xf32> to vector<8x32xf32>
    %384 = arith.addf %382, %383 : vector<8x32xf32>
    %385 = vector.extract_strided_slice %384 {offsets = [0, 0], sizes = [1, 32], strides = [1, 1]} : vector<8x32xf32> to vector<1x32xf32>
    %c0_165 = arith.constant 0 : index
    %c0_166 = arith.constant 0 : index
    %386 = vector.load %arg18[%c0_165, %c0_166] : memref<32x128xf32, #tpu.memory_space<vmem>>, vector<32x128xf32>
    %cst_167 = arith.constant dense<0.000000e+00> : vector<1x128xf32>
    %387 = tpu.matmul %385, %386, %cst_167 {dimension_numbers = #tpu.dot_dimension_numbers<[1], [0], [0], [1], [0, 0, 1, 1], [], []>} : vector<1x32xf32>, vector<32x128xf32>, vector<1x128xf32> -> vector<1x128xf32>
    %c0_168 = arith.constant 0 : index
    %c0_169 = arith.constant 0 : index
    %388 = vector.load %arg19[%c0_168, %c0_169] : memref<1x128xf32, #tpu.memory_space<vmem>>, vector<1x128xf32>
    %389 = arith.addf %387, %388 : vector<1x128xf32>
    %c0_170 = arith.constant 0 : index
    %c0_171 = arith.constant 0 : index
    %c0_172 = arith.constant 0 : index
    %390 = vector.load %arg20[%c0_170, %c0_171, %c0_172] : memref<1x1x128xf32, #tpu.memory_space<vmem>>, vector<1x1x128xf32>
    %391 = vector.shape_cast %390 : vector<1x1x128xf32> to vector<1x128xf32>
    %392 = vector.shape_cast %389 : vector<1x128xf32> to vector<1x1x128xf32>
    tpu.vector_store %arg20[%c0_170, %c0_171, %c0_172], %392 {strides = array<i32>} : memref<1x1x128xf32, #tpu.memory_space<vmem>>, vector<1x1x128xf32>,
    return
  }
  func.func @transform_0(%arg0: i32) -> (i32, i32, i32) {
    %c0_i32 = arith.constant 0 : i32
    %c0_i32_0 = arith.constant 0 : i32
    %c0_i32_1 = arith.constant 0 : i32
    return %arg0, %c0_i32, %c0_i32_0 : i32, i32, i32
  }
  func.func @transform_1(%arg0: i32) -> (i32, i32, i32) {
    %c0_i32 = arith.constant 0 : i32
    %c0_i32_0 = arith.constant 0 : i32
    %c0_i32_1 = arith.constant 0 : i32
    return %arg0, %c0_i32, %c0_i32_0 : i32, i32, i32
  }
  func.func @transform_2(%arg0: i32) -> (i32, i32, i32) {
    %c0_i32 = arith.constant 0 : i32
    %c0_i32_0 = arith.constant 0 : i32
    %c0_i32_1 = arith.constant 0 : i32
    return %arg0, %c0_i32, %c0_i32_0 : i32, i32, i32
  }
  func.func @transform_3(%arg0: i32) -> (i32, i32) {
    %c0_i32 = arith.constant 0 : i32
    %c0_i32_0 = arith.constant 0 : i32
    %c0_i32_1 = arith.constant 0 : i32
    return %c0_i32, %c0_i32_0 : i32, i32
  }
  func.func @transform_4(%arg0: i32) -> (i32, i32) {
    %c0_i32 = arith.constant 0 : i32
    %c0_i32_0 = arith.constant 0 : i32
    %c0_i32_1 = arith.constant 0 : i32
    return %c0_i32, %c0_i32_0 : i32, i32
  }
  func.func @transform_5(%arg0: i32) -> (i32, i32, i32) {
    %c0_i32 = arith.constant 0 : i32
    %c0_i32_0 = arith.constant 0 : i32
    %c0_i32_1 = arith.constant 0 : i32
    %c0_i32_2 = arith.constant 0 : i32
    return %c0_i32, %c0_i32_0, %c0_i32_1 : i32, i32, i32
  }
  func.func @transform_6(%arg0: i32) -> (i32, i32, i32) {
    %c0_i32 = arith.constant 0 : i32
    %c0_i32_0 = arith.constant 0 : i32
    %c0_i32_1 = arith.constant 0 : i32
    %c0_i32_2 = arith.constant 0 : i32
    return %c0_i32, %c0_i32_0, %c0_i32_1 : i32, i32, i32
  }
  func.func @transform_7(%arg0: i32) -> (i32, i32, i32) {
    %c0_i32 = arith.constant 0 : i32
    %c0_i32_0 = arith.constant 0 : i32
    %c0_i32_1 = arith.constant 0 : i32
    %c0_i32_2 = arith.constant 0 : i32
    return %c0_i32, %c0_i32_0, %c0_i32_1 : i32, i32, i32
  }
  func.func @transform_8(%arg0: i32) -> (i32, i32, i32) {
    %c0_i32 = arith.constant 0 : i32
    %c0_i32_0 = arith.constant 0 : i32
    %c0_i32_1 = arith.constant 0 : i32
    %c0_i32_2 = arith.constant 0 : i32
    return %c0_i32, %c0_i32_0, %c0_i32_1 : i32, i32, i32
  }
  func.func @transform_9(%arg0: i32) -> (i32, i32, i32) {
    %c0_i32 = arith.constant 0 : i32
    %c0_i32_0 = arith.constant 0 : i32
    %c0_i32_1 = arith.constant 0 : i32
    %c0_i32_2 = arith.constant 0 : i32
    return %c0_i32, %c0_i32_0, %c0_i32_1 : i32, i32, i32
  }
  func.func @transform_10(%arg0: i32) -> (i32, i32, i32) {
    %c0_i32 = arith.constant 0 : i32
    %c0_i32_0 = arith.constant 0 : i32
    %c0_i32_1 = arith.constant 0 : i32
    %c0_i32_2 = arith.constant 0 : i32
    return %c0_i32, %c0_i32_0, %c0_i32_1 : i32, i32, i32
  }
  func.func @transform_11(%arg0: i32) -> (i32, i32, i32) {
    %c0_i32 = arith.constant 0 : i32
    %c0_i32_0 = arith.constant 0 : i32
    %c0_i32_1 = arith.constant 0 : i32
    %c0_i32_2 = arith.constant 0 : i32
    return %c0_i32, %c0_i32_0, %c0_i32_1 : i32, i32, i32
  }
  func.func @transform_12(%arg0: i32) -> (i32, i32, i32) {
    %c0_i32 = arith.constant 0 : i32
    %c0_i32_0 = arith.constant 0 : i32
    %c0_i32_1 = arith.constant 0 : i32
    %c0_i32_2 = arith.constant 0 : i32
    return %c0_i32, %c0_i32_0, %c0_i32_1 : i32, i32, i32
  }
  func.func @transform_13(%arg0: i32) -> (i32, i32, i32) {
    %c0_i32 = arith.constant 0 : i32
    %c0_i32_0 = arith.constant 0 : i32
    %c0_i32_1 = arith.constant 0 : i32
    %c0_i32_2 = arith.constant 0 : i32
    return %c0_i32, %c0_i32_0, %c0_i32_1 : i32, i32, i32
  }
  func.func @transform_14(%arg0: i32) -> (i32, i32, i32) {
    %c0_i32 = arith.constant 0 : i32
    %c0_i32_0 = arith.constant 0 : i32
    %c0_i32_1 = arith.constant 0 : i32
    %c0_i32_2 = arith.constant 0 : i32
    return %c0_i32, %c0_i32_0, %c0_i32_1 : i32, i32, i32
  }
  func.func @transform_15(%arg0: i32) -> (i32, i32, i32) {
    %c0_i32 = arith.constant 0 : i32
    %c0_i32_0 = arith.constant 0 : i32
    %c0_i32_1 = arith.constant 0 : i32
    %c0_i32_2 = arith.constant 0 : i32
    return %c0_i32, %c0_i32_0, %c0_i32_1 : i32, i32, i32
  }
  func.func @transform_16(%arg0: i32) -> (i32, i32, i32) {
    %c0_i32 = arith.constant 0 : i32
    %c0_i32_0 = arith.constant 0 : i32
    %c0_i32_1 = arith.constant 0 : i32
    %c0_i32_2 = arith.constant 0 : i32
    return %c0_i32, %c0_i32_0, %c0_i32_1 : i32, i32, i32
  }
  func.func @transform_17(%arg0: i32) -> (i32, i32) {
    %c0_i32 = arith.constant 0 : i32
    %c0_i32_0 = arith.constant 0 : i32
    %c0_i32_1 = arith.constant 0 : i32
    return %c0_i32, %c0_i32_0 : i32, i32
  }
  func.func @transform_18(%arg0: i32) -> (i32, i32) {
    %c0_i32 = arith.constant 0 : i32
    %c0_i32_0 = arith.constant 0 : i32
    %c0_i32_1 = arith.constant 0 : i32
    return %c0_i32, %c0_i32_0 : i32, i32
  }
  func.func @transform_19(%arg0: i32) -> (i32, i32, i32) {
    %c0_i32 = arith.constant 0 : i32
    %c0_i32_0 = arith.constant 0 : i32
    %c0_i32_1 = arith.constant 0 : i32
    return %arg0, %c0_i32, %c0_i32_0 : i32, i32, i32
  }
}

</mosaic_0001>

<bundles_post_ra>
// kernel: forward.1
= control target key start
LH: loop header
LB: loop body
LE: loop exit
PB: predicated region body
PF: predicated region fallthrough
CT: control target
= control target key end

     0   :  { %s4288_s0 = inlined_call_operand.vmem [shape: f32[2,8,32], index: 0, kind: input, shape index: {}]   ;;  %s4289_s1 = inlined_call_operand.vmem [shape: f32[2,1,8], index: 1, kind: input, shape index: {}]   ;;  %s4290_s2 = inlined_call_operand.vmem [shape: f32[2,8,32], index: 2, kind: input, shape index: {}]   ;;  %s4291_s3 = inlined_call_operand.vmem [shape: f32[1,32], index: 3, kind: input, shape index: {}]   ;;  %s4292_s4 = inlined_call_operand.vmem [shape: f32[1,32], index: 4, kind: input, shape index: {}]   ;;  %s4293_s5 = inlined_call_operand.vmem [shape: f32[2,32,96], index: 5, kind: input, shape index: {}]   ;;  %s4294_s6 = inlined_call_operand.vmem [shape: f32[2,1,96], index: 6, kind: input, shape index: {}]   ;;  %s4295_s7 = inlined_call_operand.vmem [shape: f32[2,32,32], index: 7, kind: input, shape index: {}]   ;;  %s4296_s8 = inlined_call_operand.vmem [shape: f32[2,1,32], index: 8, kind: input, shape index: {}]   ;;  %s4297_s9 = inlined_call_operand.vmem [shape: f32[2,1,32], index: 9, kind: input, shape index: {}]   ;;  %s4298_s10 = inlined_call_operand.vmem [shape: f32[2,1,32], index: 10, kind: input, shape index: {}]   ;;  %s4299_s11 = inlined_call_operand.vmem [shape: f32[2,32,64], index: 11, kind: input, shape index: {}]   ;;  %s4300_s12 = inlined_call_operand.vmem [shape: f32[2,1,64], index: 12, kind: input, shape index: {}]   ;;  %s4301_s13 = inlined_call_operand.vmem [shape: f32[2,64,32], index: 13, kind: input, shape index: {}]   ;;  %s4302_s14 = inlined_call_operand.vmem [shape: f32[2,1,32], index: 14, kind: input, shape index: {}]   ;;  %s4303_s15 = inlined_call_operand.vmem [shape: f32[2,1,32], index: 15, kind: input, shape index: {}]   ;;  %s4304_s16 = inlined_call_operand.vmem [shape: f32[2,1,32], index: 16, kind: input, shape index: {}]   ;;  %s4305_s17 = inlined_call_operand.vmem [shape: f32[32,128], index: 17, kind: input, shape index: {}]   ;;  %s4306_s18 = inlined_call_operand.vmem [shape: f32[1,128], index: 18, kind: input, shape index: {}]   ;;  %s4307_s19 = inlined_call_operand.hbm [shape: f32[2,1,128], index: 19, kind: output, shape index: {}]  }
   0x1   :  { %4326 = sst [smem:[#allocation9_spill]] %s4288_s0 }
   0x2   :  { %4327 = sst [smem:[#allocation10_spill]] %s4289_s1 }
   0x3   :  { %4328 = sst [smem:[#allocation11_spill]] %s4290_s2 }
   0x4   :  { %4329 = sst [smem:[#allocation12_spill]] %s4291_s3 }
   0x5   :  { %4330 = sst [smem:[#allocation13_spill]] %s4292_s4 }
   0x6   :  { %24 = vsyncpa [#allocation3], 0 }
   0x7   :  { %26 = vsyncpa [#allocation3 + $0x1], 0  ;;  %s3755_s0 = smov 0   ;;  %s3757_s30 = smov 0  }
   0x8   :  { %s3759_s20 = smov 0   ;;  %s3761_s21 = smov 0  }
   0x9 LB: > { %4331 = sst [smem:[#allocation5_spill]] %s3631_s20  ;;  %s3776_s1 = sadd.s32 4294967295, %s3635_s21   ;;  %s3635_s21 = sphi %s3761_s21, %s4357_s21   ;;  %s3631_s20 = sphi %s3759_s20, %s4359_s20   ;;  %s3627_s30 = sphi %s3757_s30, %s4361_s30   ;;  %s3623_s0 = sphi %s3755_s0, %s4360_s0  }
   0xa   : > { %s3037_s22 = sadd.s32 4294967294, %s3635_s21   ;;  %s3780_s2 = sadd.s32 1, %s3635_s21  }
   0xb   : > { %4332 = sst [smem:[#allocation6_spill]] %s3780_s2  ;;  %s453_s23 = sadd.s32 1, %s3631_s20 }
   0xc   : > { %s450_s24 = ssub.s32 %s3635_s21, %s3780_s2  ;;  %p463_p0 = scmp.ne.s32.totalorder %s3631_s20, %s3627_s30 }
   0xd   : > { %p451_p1 = scmp.eq.s32.totalorder %s450_s24, 0  ;;  %p464_p2 = scmp.eq.s32.totalorder %s3776_s1, 1 }
   0xe   : > { %p469_p3 = scmp.ne.s32.totalorder %s3627_s30, %s3623_s0  ;;  %p470_p4 = scmp.eq.s32.totalorder %s3037_s22, 1 }
   0xf   : > { %s3791_s25 = scalar_select %p451_p1, %s3631_s20, %s453_s23  }
  0x10   : > { %p3793_p5 = por %p464_p2, %p463_p0  ;;  %p3797_p6 = por %p470_p4, %p469_p3 }
  0x11   : > { %4333 = sst [smem:[#allocation7_spill]] %s3791_s25  ;;  %p3040_p7 = scmp.ge.s32.totalorder %s3635_s21, 1 }
  0x12   : > { %s4335_s26 = scalar_select %p3797_p6, 1, 0 }
  0x13   : > { %p556_p8 = scmp.lt.s32.totalorder %s3635_s21, 3 }
  0x14   : > { %4336 = sst [smem:[#allocation8_spill]] %s4335_s26 }
  0x15   : > { %p557_p9 = pnand %p3040_p7, %p556_p8 }
  0x16   : > { %p617_p10 = scmp.lt.s32.totalorder (!%p557_p9), %s3776_s1, 1  ;;  %vm631_vm0 = vcmask (!%p557_p9), 261120   ;;  %s4337_s23 = sld [smem:[#allocation9_spill]] (!%p557_p9)  ;;  %v663_v7 = vld [vmem:[%s4293_s5] sm:$0xff] (!%p557_p9)  ;;  %v664_v8 = vld [vmem:[%s4293_s5 + $0x8] sm:$0xff] (!%p557_p9)  ;;  %v665_v9 = vld [vmem:[%s4293_s5 + $0x10] sm:$0xff] (!%p557_p9)  ;;  %v827_v30 = vlaneseq (!%p557_p9) }
  0x17   : > { %560 = sbr.rel (%p557_p9) target bundleno = 6110 (0x17de), region = 96  ;;  %v3637_v10 = vmov (!%p557_p9), 0.0|0.0   ;;  %v3406_v11 = vpack.c.bf16 (!%p557_p9), %v664_v8, %v663_v7  ;;  %v666_v12 = vld [vmem:[%s4293_s5 + $0x18] sm:$0xff] (!%p557_p9)  ;;  %vm3638_vm1 = vmmov (!%p557_p9), 0   ;;  %v3639_v13 = vmov (!%p557_p9), 0.0   ;;  %s4338_s25 = sld [smem:[#allocation12_spill]] (!%p557_p9) }
  0x18   : > { %3405 = vmatprep.subr.bf16.mxu0 (!%p557_p9), %v3637_v10  ;;  %3218 = vmatprep.mubr.msk.f32.mxu0 (!%p557_p9), %vm3638_vm1, %v3639_v13  ;;  %v3409_v14 = vpack.c.bf16 (!%p557_p9), %v666_v12, %v665_v9  ;;  %s4339_s4 = sld [smem:[#allocation13_spill]] (!%p557_p9)  ;;  %v3045_v24 = vld [vmem:[%s4294_s6] ss:$0 sm:$0xff] (!%p557_p9)  ;;  %s4322_s20 = smov (!%p557_p9), 96   ;;  %vm750_vm2 = vcmask (!%p557_p9), 64512   ;;  %v828_v33 = vshrl.u32 (!%p557_p9), %v827_v30, 7 }
  0x19   : > { %3221 = vmatprep.subr.mxu1 (!%p557_p9), %v3639_v13  ;;  %3223 = vmatprep.mubr.msk.f32.mxu1 (!%p557_p9), %vm3638_vm1, %v3639_v13  ;;  %s3642_s2 = smov (!%p557_p9), 88   ;;  %s4340_s22 = sld [smem:[#allocation10_spill]] (!%p557_p9)  ;;  %vm1434_vm3 = vcmask (!%p557_p9), 130048   ;;  %vm1436_vm4 = vcmask (!%p557_p9), 195584   ;;  %vm1660_vm5 = vcmask (!%p557_p9), 523264  }
  0x1a   : > { %3407 = vmatpush3.bf16.msra.mxu0 (!%p557_p9), %v3406_v11  ;;  %v829_v35 = vsub.s32 (!%p557_p9), 0, %v828_v33  ;;  %s4320_s26 = smov (!%p557_p9), 112   ;;  %s4314_s29 = smov (!%p557_p9), 72  }
  0x1b   : > { %3408 = vmatprep.subr.bf16.mxu0 (!%p557_p9), %v3637_v10 }
  0x1d   : > { %v3043_v19 = vld [vmem:[%s4338_s25] ss:$0 sm:$0xff] (!%p557_p9)  ;;  %s4321_s25 = smov (!%p557_p9), 120  }
  0x1e   : > { %s3805_s27 = scalar_select %p617_p10, %s3776_s1, 1  ;;  %3410 = vmatpush3.bf16.msra.mxu0 %v3409_v14  ;;  %v3044_v21 = vld [vmem:[%s4339_s4] ss:$0 sm:$0xff] }
  0x1f   : > { %3241 = vmatprep.subr.mxu0 %v3639_v13 }
  0x20   : > { %s4312_s28 = sshll.u32 %s3805_s27, 3 }
  0x21   : > { %s620_s24 = scalar_lea.vmem %s4337_s23, %s4312_s28  ;;  %s623_s23 = scalar_lea.vmem %s4340_s22, %s3805_s27 }
  0x22   : > { %v628_v0 = vld [vmem:[%s620_s24] sm:$0xff]  ;;  %s4313_s24 = smov 64   ;;  %s4319_s28 = smov 80  }
  0x23   : > { %v632_v1 = vsel %vm631_vm0, %v628_v0, 0.0  ;;  %v660_v31 = vld [vmem:[%s623_s23] sm:$0x1]  ;;  %s4318_s22 = smov 104   ;;  %s4317_s23 = smov 48  }
  0x24   : > { %633 = vadd.xlane.f32.xlu0 %v632_v1  ;;  %v661_v32 = vsub.f32 1.0, %v660_v31 }
  0x26   : > { %v662_v34 = vmul.f32 -10000.0, %v661_v32 }
  0x28   : > { %v3871_v36 = vrot.slane %v662_v34, %v829_v35 }
  0xb1   : > { %v634_v2 = vpop.xlane.xlu0 %633 }
  0xb2   : > { %v636_v3 = vmul.f32 0.03125, %v634_v2 }
  0xb4   : > { %v637_v4 = vsub.f32 %v628_v0, %v636_v3 }
  0xb6   : > { %v638_v5 = vmul.f32 %v637_v4, %v637_v4 }
  0xb8   : > { %v639_v6 = vsel %vm631_vm0, %v638_v5, 0.0 }
  0xb9   : > { %640 = vadd.xlane.f32.xlu0 %v639_v6 }
 0x146   : > { %v641_v15 = vpop.xlane.xlu0 %640 }
 0x147   : > { %v642_v16 = vmul.f32 0.03125, %v641_v15 }
 0x149   : > { %v643_v17 = vadd.f32 1e-12, %v642_v16 }
 0x14b   : > { %3527 = vrsqrt.f32 %v643_v17 }
 0x155   : > { %v3528_v18 = vpop.eup %3527 }
 0x156   : > { %v645_v20 = vmul.f32 %v3528_v18, %v637_v4 }
 0x158   : > { %v652_v22 = vmul.f32 %v3043_v19, %v645_v20 }
 0x15a   : > { %v3841_v23 = vadd.f32 %v3044_v21, %v652_v22 }
 0x15c   : > { %3219 = vmatmul.mubr.msk.f32.vlgmr.msra.gmra.mrb[0].mxu0 %vm631_vm0, %v3841_v23 }
 0x15d   : > { %3243 = vmatprep.mubr.msk.f32.mxu0 %vm3638_vm1, %v3639_v13 }
 0x22f   : > { %v743_v25 = vpop.f32.mrb[0].mxu0 }
 0x230   : > { %v3850_v26 = vadd.f32 %v3045_v24, %v743_v25  ;;  %v3220_v27 = vpop.f32.mrb[1].mxu0 }
 0x232   : > { %844 = vrot.lane.b32.xlu0 %v3850_v26, %s4313_s24  ;;  %748 = vrot.lane.b32.xlu1 %v3850_v26, %s4322_s20  ;;  %s4315_s24 = smov 56   ;;  %s4341_s20 = smov 96  }
 0x236   : > { %922 = vrot.lane.b32.xlu0 %v3850_v26, %s3642_s2 }
 0x23a   : > { %920 = vrot.lane.b32.xlu0 %v3850_v26, %s4321_s25  ;;  %s4342_s25 = smov 120  }
 0x2a4   : > { %v749_v28 = vpop.permute.xlu1 %748  ;;  %v845_v29 = vpop.permute.xlu0 %844 }
 0x2a5   : > { %3222 = vmatpush3.xpose.msk.msra.mxu1 %vm750_vm2, %v749_v28 }
 0x2a6   : > { %3226 = vmatprep.subr.mxu1 %v3639_v13 }
 0x2a8   : > { %3224 = vmatmul.mubr.msk.f32.vlgmr.msra.gmra.mrb[0].mxu1 %vm750_vm2, %v3850_v26  ;;  %v923_v48 = vpop.permute.xlu0 %922 }
 0x2a9   : > { %3227 = vmatpush3.msra.mxu1 %v845_v29  ;;  %3228 = vmatprep.mubr.msk.f32.mxu1 %vm3638_vm1, %v3639_v13 }
 0x2aa   : > { %3231 = vmatprep.subr.mxu1 %v3639_v13 }
 0x2ac   : > { %v921_v49 = vpop.permute.xlu0 %920 }
 0x37b   : > { %v821_v37 = vpop.f32.mrb[0].mxu1 }
 0x37c   : > { %v825_v38 = vmul.f32 0.35355338, %v821_v37  ;;  %v3225_v39 = vpop.f32.mrb[1].mxu1 }
 0x37e   : > { %v832_v40 = vadd.f32 %v3871_v36, %v825_v38 }
 0x380   : > { %v833_v41 = vsel %vm750_vm2, %v832_v40, -inf }
 0x381   : > { %834 = vmax.xlane.f32.xlu1 %v833_v41  ;;  %v1439_v41 = vld [vmem:[%s4295_s7 + $0x8] sm:$0xff] }
 0x392   : > { %1089 = vrot.lane.b32.xlu1 %v3850_v26, %s4319_s28  ;;  %s4323_s28 = smov 24  }
 0x40e   : > { %v835_v42 = vpop.xlane.xlu1 %834 }
 0x40f   : > { %v836_v43 = vsub.f32 %v832_v40, %v835_v42  ;;  %v1438_v40 = vld [vmem:[%s4295_s7] sm:$0xff] }
 0x410   : > { %v3412_v42 = vpack.c.bf16 %v1439_v41, %v1438_v40 }
 0x411   : > { %v837_v44 = vmul.f32 1.442695, %v836_v43  ;;  %v1440_v43 = vld [vmem:[%s4295_s7 + $0x10] sm:$0xff] }
 0x412   : > { %v1090_v45 = vpop.permute.xlu1 %1089 }
 0x413   : > { %3529 = vpow2.f32 %v837_v44  ;;  %3242 = vmatpush3.xpose.msk.msra.mxu0 %vm750_vm2, %v1090_v45  ;;  %v1441_v44 = vld [vmem:[%s4295_s7 + $0x18] sm:$0xff] }
 0x414   : > { %3251 = vmatprep.subr.mxu0 %v3639_v13  ;;  %v3415_v45 = vpack.c.bf16 %v1441_v44, %v1440_v43 }
 0x41d   : > { %v3530_v46 = vpop.eup %3529 }
 0x41e   : > { %v839_v47 = vsel %vm750_vm2, %v3530_v46, 0.0 }
 0x41f   : > { %840 = vadd.xlane.f32.xlu0 %v839_v47 }
 0x435   : > { %1087 = vrot.lane.b32.xlu0 %v3850_v26, %s4320_s26  ;;  %s4343_s26 = smov 112  }
 0x439   : > { %1256 = vrot.lane.b32.xlu0 %v3850_v26, %s4314_s29  ;;  %s4316_s29 = smov 40  }
 0x43d   : > { %1254 = vrot.lane.b32.xlu0 %v3850_v26, %s4318_s22  ;;  %s4344_s22 = smov 80  }
 0x4ac   : > { %v841_v50 = vpop.xlane.xlu0 %840 }
 0x4ad   : > { %3531 = vrcp.f32 %v841_v50 }
 0x4b0   : > { %v1088_v51 = vpop.permute.xlu0 %1087 }
 0x4b1   : > { %3244 = vmatmul.mubr.msk.f32.vlgmr.msra.gmra.mrb[2].mxu0 %vm750_vm2, %v1088_v51 }
 0x4b2   : > { %3253 = vmatprep.mubr.msk.f32.mxu0 %vm3638_vm1, %v3639_v13 }
 0x4b4   : > { %v1257_v52 = vpop.permute.xlu0 %1256 }
 0x4b5   : > { %3252 = vmatpush3.xpose.msk.msra.mxu0 %vm750_vm2, %v1257_v52 }
 0x4b6   : > { %3411 = vmatprep.subr.bf16.mxu0 %v3637_v10 }
 0x4b7   : > { %v3532_v53 = vpop.eup %3531 }
 0x4b8   : > { %v843_v54 = vmul.f32 %v3532_v53, %v3530_v46  ;;  %v1255_v55 = vpop.permute.xlu0 %1254 }
 0x4b9   : > { %3254 = vmatmul.mubr.msk.f32.vlgmr.msra.gmra.mrb[4].mxu0 %vm750_vm2, %v1255_v55 }
 0x4ba   : > { %3229 = vmatmul.mubr.msk.f32.vlgmr.msra.gmra.mrb[2].mxu1 %vm750_vm2, %v843_v54  ;;  %3269 = vmatprep.mubr.msk.f32.mxu0 %vm3638_vm1, %v3639_v13 }
 0x4bb   : > { %3232 = vmatpush3.xpose.msk.msra.mxu1 %vm750_vm2, %v923_v48  ;;  %3233 = vmatprep.mubr.msk.f32.mxu1 %vm3638_vm1, %v3639_v13 }
 0x4bc   : > { %3236 = vmatprep.subr.mxu1 %v3639_v13  ;;  %3413 = vmatpush3.bf16.msra.mxu0 %v3412_v42 }
 0x4bd   : > { %3414 = vmatprep.subr.bf16.mxu0 %v3637_v10 }
 0x4be   : > { %3234 = vmatmul.mubr.msk.f32.vlgmr.msra.gmra.mrb[4].mxu1 %vm750_vm2, %v921_v49 }
 0x4bf   : > { %3238 = vmatprep.mubr.msk.f32.mxu1 %vm3638_vm1, %v3639_v13 }
 0x4c0   : > { %3416 = vmatpush3.bf16.msra.mxu0 %v3415_v45 }
 0x4c1   : > { %3423 = vmatprep.subr.bf16.mxu0 %v3637_v10 }
 0x584   : > { %v1161_v56 = vpop.f32.mrb[2].mxu0 }
 0x585   : > { %v1165_v57 = vmul.f32 0.35355338, %v1161_v56  ;;  %v3245_v58 = vpop.f32.mrb[3].mxu0 }
 0x586   : > { %v3059_v58 = vld [vmem:[%s4296_s8] ss:$0 sm:$0xff] }
 0x587   : > { %v1166_v59 = vadd.f32 %v1165_v57, %v3871_v36 }
 0x589   : > { %v1167_v60 = vsel %vm750_vm2, %v1166_v59, -inf }
 0x58a   : > { %1168 = vmax.xlane.f32.xlu1 %v1167_v60 }
 0x58c   : > { %v1328_v61 = vpop.f32.mrb[4].mxu0 }
 0x58d   : > { %v3904_v62 = vpop.f32.mrb[2].mxu1  ;;  %v3255_v63 = vpop.f32.mrb[5].mxu0  ;;  %v1332_v2 = vmul.f32 0.35355338, %v1328_v61 }
 0x58e   : > { %v3230_v0 = vpop.f32.mrb[3].mxu1 }
 0x58f   : > { %v1333_v7 = vadd.f32 %v1332_v2, %v3871_v36 }
 0x591   : > { %v994_v1 = vpop.f32.mrb[4].mxu1  ;;  %v1334_v8 = vsel %vm750_vm2, %v1333_v7, -inf }
 0x592   : > { %v998_v3 = vmul.f32 0.35355338, %v994_v1  ;;  %v3235_v4 = vpop.f32.mrb[5].mxu1 }
 0x594   : > { %v999_v5 = vadd.f32 %v998_v3, %v3871_v36 }
 0x596   : > { %v1000_v6 = vsel %vm750_vm2, %v999_v5, -inf }
 0x597   : > { %1001 = vmax.xlane.f32.xlu0 %v1000_v6  ;;  %v1553_v6 = vld [vmem:[%s4299_s11 + $0x8] sm:$0xff] }
 0x59b   : > { %1335 = vmax.xlane.f32.xlu0 %v1334_v8  ;;  %v1555_v8 = vld [vmem:[%s4299_s11 + $0x18] sm:$0xff] }
 0x617   : > { %v1169_v9 = vpop.xlane.xlu1 %1168 }
 0x618   : > { %v1170_v11 = vsub.f32 %v1166_v59, %v1169_v9 }
 0x61a   : > { %v1171_v12 = vmul.f32 1.442695, %v1170_v11 }
 0x61c   : > { %3533 = vpow2.f32 %v1171_v12 }
 0x624   : > { %v1002_v14 = vpop.xlane.xlu0 %1001 }
 0x625   : > { %v1003_v15 = vsub.f32 %v999_v5, %v1002_v14  ;;  %v1552_v5 = vld [vmem:[%s4299_s11] sm:$0xff] }
 0x626   : > { %v3534_v16 = vpop.eup %3533 }
 0x627   : > { %v1004_v17 = vmul.f32 1.442695, %v1003_v15  ;;  %v1173_v18 = vsel %vm750_vm2, %v3534_v16, 0.0 }
 0x628   : > { %1174 = vadd.xlane.f32.xlu0 %v1173_v18  ;;  %v1336_v19 = vpop.xlane.xlu0 %1335  ;;  %v3062_v18 = vld [vmem:[%s4298_s10] ss:$0 sm:$0xff] }
 0x629   : > { %3535 = vpow2.f32 %v1004_v17  ;;  %v1337_v20 = vsub.f32 %v1333_v7, %v1336_v19  ;;  %v3418_v7 = vpack.c.bf16 %v1553_v6, %v1552_v5  ;;  %v3067_v5 = vld [vmem:[%s4303_s15] ss:$0 sm:$0xff] }
 0x62b   : > { %v1338_v21 = vmul.f32 1.442695, %v1337_v20 }
 0x62d   : > { %3537 = vpow2.f32 %v1338_v21  ;;  %v1645_v21 = vld [vmem:[%s4301_s13] sm:$0xff] }
 0x633   : > { %v3536_v22 = vpop.eup %3535 }
 0x634   : > { %v1006_v24 = vsel %vm750_vm2, %v3536_v22, 0.0 }
 0x635   : > { %1007 = vadd.xlane.f32.xlu0 %v1006_v24 }
 0x637   : > { %v3538_v25 = vpop.eup %3537 }
 0x638   : > { %v1340_v27 = vsel %vm750_vm2, %v3538_v25, 0.0 }
 0x639   : > { %1341 = vadd.xlane.f32.xlu1 %v1340_v27  ;;  %v1648_v27 = vld [vmem:[%s4301_s13 + $0x18] sm:$0xff] }
 0x64a   : > { %1178 = vrot.lane.b32.xlu1 %v3850_v26, %s4317_s23  ;;  %s4346_s23 = smov 72  }
 0x64b   : > { %1011 = vrot.lane.b32.xlu0 %v3850_v26, %s4315_s24  ;;  %s4325_s24 = smov 8  }
 0x64e   : > { %1345 = vrot.lane.b32.xlu1 %v3850_v26, %s4316_s29  ;;  %s4324_s29 = smov 16  }
 0x6b5   : > { %v1175_v28 = vpop.xlane.xlu0 %1174 }
 0x6c2   : > { %v1008_v29 = vpop.xlane.xlu0 %1007 }
 0x6c3   : > { %3539 = vrcp.f32 %v1008_v29  ;;  %v1649_v29 = vld [vmem:[%s4301_s13 + $0x20] sm:$0xff] }
 0x6c4   : > { %3541 = vrcp.f32 %v1175_v28 }
 0x6c6   : > { %v1342_v30 = vpop.xlane.xlu1 %1341  ;;  %v1012_v31 = vpop.permute.xlu0 %1011 }
 0x6c7   : > { %3237 = vmatpush3.msra.mxu1 %v1012_v31  ;;  %3543 = vrcp.f32 %v1342_v30  ;;  %v1650_v30 = vld [vmem:[%s4301_s13 + $0x28] sm:$0xff] }
 0x6c8   : > { %3246 = vmatprep.subr.mxu1 %v3639_v13  ;;  %v3430_v31 = vpack.c.bf16 %v1650_v30, %v1649_v29 }
 0x6ca   : > { %v1179_v34 = vpop.permute.xlu1 %1178 }
 0x6cd   : > { %v3540_v32 = vpop.eup %3539 }
 0x6ce   : > { %v1010_v33 = vmul.f32 %v3540_v32, %v3536_v22  ;;  %v3542_v35 = vpop.eup %3541  ;;  %v1346_v38 = vpop.permute.xlu1 %1345  ;;  %v1646_v22 = vld [vmem:[%s4301_s13 + $0x8] sm:$0xff]  ;;  %v1651_v32 = vld [vmem:[%s4301_s13 + $0x30] sm:$0xff] }
 0x6cf   : > { %v1177_v26 = vmul.f32 %v3542_v35, %v3534_v16  ;;  %v3061_v16 = vld [vmem:[%s4297_s9] ss:$0 sm:$0xff]  ;;  %v3424_v24 = vpack.c.bf16 %v1646_v22, %v1645_v21 }
 0x6d0   : > { %3239 = vmatmul.mubr.msk.f32.vlgmr.msra.gmra.mrb[6].mxu1 %vm750_vm2, %v1010_v33  ;;  %v1652_v33 = vld [vmem:[%s4301_s13 + $0x38] sm:$0xff]  ;;  %v3063_v35 = vld [vmem:[%s4300_s12] ss:$0 sm:$0xff] }
 0x6d1   : > { %3247 = vmatpush3.msra.mxu1 %v1179_v34  ;;  %3248 = vmatprep.mubr.msk.f32.mxu1 %vm3638_vm1, %v3639_v13  ;;  %v3544_v37 = vpop.eup %3543  ;;  %v3433_v34 = vpack.c.bf16 %v1652_v33, %v1651_v32 }
 0x6d2   : > { %3256 = vmatprep.subr.mxu1 %v3639_v13  ;;  %v1344_v39 = vmul.f32 %v3544_v37, %v3538_v25  ;;  %v1647_v25 = vld [vmem:[%s4301_s13 + $0x10] sm:$0xff] }
 0x6d3   : > { %v3427_v28 = vpack.c.bf16 %v1648_v27, %v1647_v25 }
 0x6d4   : > { %3249 = vmatmul.mubr.msk.f32.vlgmr.msra.gmra.mrb[8].mxu1 %vm750_vm2, %v1177_v26 }
 0x6d5   : > { %3257 = vmatpush3.msra.mxu1 %v1346_v38  ;;  %3258 = vmatprep.mubr.msk.f32.mxu1 %vm3638_vm1, %v3639_v13 }
 0x6d6   : > { %3417 = vmatprep.subr.bf16.mxu1 %v3637_v10 }
 0x6d8   : > { %3259 = vmatmul.mubr.msk.f32.vlgmr.msra.gmra.mrb[10].mxu1 %vm750_vm2, %v1344_v39 }
 0x6d9   : > { %3280 = vmatprep.mubr.msk.f32.mxu1 %vm3638_vm1, %v3639_v13  ;;  %3419 = vmatpush3.bf16.msra.mxu1 %v3418_v7  ;;  %v3068_v7 = vld [vmem:[%s4304_s16] ss:$0 sm:$0xff] }
 0x6da   : > { %3420 = vmatprep.subr.bf16.mxu1 %v3637_v10 }
 0x7a3   : > { %v1083_v46 = vpop.f32.mrb[6].mxu1 }
 0x7a4   : > { %1422 = vrot.lane.b32.xlu1 %v1083_v46, %s4325_s24  ;;  %v3240_v47 = vpop.f32.mrb[7].mxu1  ;;  %s4348_s24 = smov 48  }
 0x7a7   : > { %v1250_v48 = vpop.f32.mrb[8].mxu1 }
 0x7a8   : > { %1426 = vrot.lane.b32.xlu0 %v1250_v48, %s4324_s29  ;;  %v3250_v49 = vpop.f32.mrb[9].mxu1  ;;  %v3065_v48 = vld [vmem:[%s4302_s14] ss:$0 sm:$0xff]  ;;  %s4349_s29 = smov 40  }
 0x7ab   : > { %v1417_v50 = vpop.f32.mrb[10].mxu1 }
 0x7ac   : > { %1430 = vrot.lane.b32.xlu1 %v1417_v50, %s4323_s28  ;;  %v3260_v51 = vpop.f32.mrb[11].mxu1  ;;  %s4345_s28 = smov 104  }
 0x816   : > { %v1423_v52 = vpop.permute.xlu1 %1422 }
 0x817   : > { %v1433_v54 = vsel %vm750_vm2, %v3904_v62, %v1423_v52 }
 0x81a   : > { %v1427_v53 = vpop.permute.xlu0 %1426 }
 0x81b   : > { %v1435_v55 = vsel %vm1434_vm3, %v1433_v54, %v1427_v53 }
 0x81e   : > { %v1431_v56 = vpop.permute.xlu1 %1430 }
 0x81f   : > { %v1437_v57 = vsel %vm1436_vm4, %v1435_v55, %v1431_v56 }
 0x820   : > { %3270 = vmatmul.mubr.msk.f32.vlgmr.msra.gmra.mrb[6].mxu0 %vm631_vm0, %v1437_v57 }
 0x821   : > { %3299 = vmatprep.mubr.msk.f32.mxu0 %vm3638_vm1, %v3639_v13  ;;  %3425 = vmatpush3.bf16.msra.mxu0 %v3424_v24 }
 0x822   : > { %3426 = vmatprep.subr.bf16.mxu0 %v3637_v10 }
 0x825   : > { %3428 = vmatpush3.bf16.msra.mxu0 %v3427_v28 }
 0x826   : > { %3429 = vmatprep.subr.bf16.mxu0 %v3637_v10 }
 0x829   : > { %3431 = vmatpush3.bf16.msra.mxu0 %v3430_v31 }
 0x82a   : > { %3432 = vmatprep.subr.bf16.mxu0 %v3637_v10 }
 0x82d   : > { %3434 = vmatpush3.bf16.msra.mxu0 %v3433_v34 }
 0x82e   : > { %3323 = vmatprep.subr.mxu0 %v3639_v13 }
 0x8f3   : > { %v1518_v59 = vpop.f32.mrb[6].mxu0 }
 0x8f4   : > { %v1519_v60 = vadd.f32 %v3059_v58, %v1518_v59  ;;  %v3271_v61 = vpop.f32.mrb[7].mxu0  ;;  %v3069_v59 = vld [vmem:[%s4293_s5 + $0x20] sm:$0xff] }
 0x8f6   : > { %v1522_v63 = vadd.f32 %v1519_v60, %v3841_v23  ;;  %v1554_v23 = vld [vmem:[%s4299_s11 + $0x10] sm:$0xff]  ;;  %v3070_v60 = vld [vmem:[%s4293_s5 + $0x28] sm:$0xff] }
 0x8f7   : > { %v3421_v9 = vpack.c.bf16 %v1555_v8, %v1554_v23  ;;  %v3436_v61 = vpack.c.bf16 %v3070_v60, %v3069_v59 }
 0x8f8   : > { %v1525_v62 = vsel %vm631_vm0, %v1522_v63, 0.0 }
 0x8f9   : > { %1526 = vadd.xlane.f32.xlu0 %v1525_v62  ;;  %3422 = vmatpush3.bf16.msra.mxu1 %v3421_v9  ;;  %v3072_v62 = vld [vmem:[%s4293_s5 + $0x38] sm:$0xff]  ;;  %v3074_v9 = vld [vmem:[%s4294_s6 + $0x1] ss:$0 sm:$0xff] }
 0x8fa   : > { %3435 = vmatprep.subr.bf16.mxu1 %v3637_v10 }
 0x986   : > { %v1527_v0 = vpop.xlane.xlu0 %1526 }
 0x987   : > { %v1528_v1 = vmul.f32 0.03125, %v1527_v0 }
 0x989   : > { %v1529_v2 = vsub.f32 %v1522_v63, %v1528_v1  ;;  %v3071_v63 = vld [vmem:[%s4293_s5 + $0x30] sm:$0xff] }
 0x98a   : > { %v3439_v0 = vpack.c.bf16 %v3072_v62, %v3071_v63 }
 0x98b   : > { %v1530_v3 = vmul.f32 %v1529_v2, %v1529_v2 }
 0x98d   : > { %v1531_v4 = vsel %vm631_vm0, %v1530_v3, 0.0 }
 0x98e   : > { %1532 = vadd.xlane.f32.xlu1 %v1531_v4 }
 0xa1b   : > { %v1533_v11 = vpop.xlane.xlu1 %1532 }
 0xa1c   : > { %v1534_v12 = vmul.f32 0.03125, %v1533_v11 }
 0xa1e   : > { %v1535_v14 = vadd.f32 1e-12, %v1534_v12 }
 0xa20   : > { %3545 = vrsqrt.f32 %v1535_v14 }
 0xa2a   : > { %v3546_v15 = vpop.eup %3545 }
 0xa2b   : > { %v1537_v17 = vmul.f32 %v3546_v15, %v1529_v2 }
 0xa2d   : > { %v1544_v19 = vmul.f32 %v3061_v16, %v1537_v17 }
 0xa2f   : > { %v1551_v20 = vadd.f32 %v3062_v18, %v1544_v19 }
 0xa31   : > { %3281 = vmatmul.mubr.msk.f32.vlgmr.msra.gmra.mrb[12].mxu1 %vm631_vm0, %v1551_v20 }
 0xa32   : > { %3310 = vmatprep.mubr.msk.f32.mxu1 %vm3638_vm1, %v3639_v13  ;;  %3437 = vmatpush3.bf16.msra.mxu1 %v3436_v61 }
 0xa33   : > { %3438 = vmatprep.subr.bf16.mxu1 %v3637_v10 }
 0xa36   : > { %3440 = vmatpush3.bf16.msra.mxu1 %v3439_v0 }
 0xa37   : > { %3313 = vmatprep.subr.mxu1 %v3639_v13 }
 0xb04   : > { %v1632_v26 = vpop.f32.mrb[12].mxu1 }
 0xb05   : > { %v1633_v37 = vadd.f32 %v3063_v35, %v1632_v26  ;;  %v3282_v38 = vpop.f32.mrb[13].mxu1 }
 0xb07   : > { %v1636_v39 = vmul.f32 %v1633_v37, %v1633_v37 }
 0xb09   : > { %v1637_v40 = vmul.f32 %v1636_v39, %v1633_v37 }
 0xb0b   : > { %v1638_v41 = vmul.f32 0.044715, %v1637_v40 }
 0xb0d   : > { %v1639_v42 = vadd.f32 %v1638_v41, %v1633_v37 }
 0xb0f   : > { %v1640_v43 = vmul.f32 0.7978846, %v1639_v42 }
 0xb11   : > { %3547 = vtanh.f32 %v1640_v43 }
 0xb1b   : > { %v3548_v44 = vpop.eup %3547 }
 0xb1c   : > { %v1642_v45 = vadd.f32 1.0, %v3548_v44 }
 0xb1e   : > { %v1643_v46 = vmul.f32 0.5, %v1642_v45 }
 0xb20   : > { %v1644_v47 = vmul.f32 %v1643_v46, %v1633_v37 }
 0xb22   : > { %3300 = vmatmul.mubr.msk.f32.vlgmr.msra.gmra.mrb[8].mxu0 %vm1660_vm5, %v1644_v47 }
 0xb23   : > { %3325 = vmatprep.mubr.msk.f32.mxu0 %vm3638_vm1, %v3639_v13 }
 0xbf5   : > { %v1730_v49 = vpop.f32.mrb[8].mxu0 }
 0xbf6   : > { %v1731_v50 = vadd.f32 %v3065_v48, %v1730_v49  ;;  %v3301_v51 = vpop.f32.mrb[9].mxu0 }
 0xbf8   : > { %v1734_v52 = vadd.f32 %v1731_v50, %v1551_v20 }
 0xbfa   : > { %v1737_v53 = vsel %vm631_vm0, %v1734_v52, 0.0 }
 0xbfb   : > { %1738 = vadd.xlane.f32.xlu0 %v1737_v53 }
 0xc88   : > { %v1739_v54 = vpop.xlane.xlu0 %1738 }
 0xc89   : > { %v1740_v55 = vmul.f32 0.03125, %v1739_v54 }
 0xc8b   : > { %v1741_v56 = vsub.f32 %v1734_v52, %v1740_v55 }
 0xc8d   : > { %v1742_v57 = vmul.f32 %v1741_v56, %v1741_v56 }
 0xc8f   : > { %v1743_v58 = vsel %vm631_vm0, %v1742_v57, 0.0 }
 0xc90   : > { %1744 = vadd.xlane.f32.xlu0 %v1743_v58 }
 0xd1d   : > { %v1745_v1 = vpop.xlane.xlu0 %1744 }
 0xd1e   : > { %v1746_v2 = vmul.f32 0.03125, %v1745_v1 }
 0xd20   : > { %v1747_v3 = vadd.f32 1e-12, %v1746_v2 }
 0xd22   : > { %3549 = vrsqrt.f32 %v1747_v3 }
 0xd2c   : > { %v3550_v4 = vpop.eup %3549 }
 0xd2d   : > { %v1749_v6 = vmul.f32 %v3550_v4, %v1741_v56 }
 0xd2f   : > { %v1756_v23 = vmul.f32 %v3067_v5, %v1749_v6 }
 0xd31   : > { %v4043_v8 = vadd.f32 %v3068_v7, %v1756_v23 }
 0xd33   : > { %3311 = vmatmul.mubr.msk.f32.vlgmr.msra.gmra.mrb[14].mxu1 %vm631_vm0, %v4043_v8 }
 0xd34   : > { %3315 = vmatprep.mubr.msk.f32.mxu1 %vm3638_vm1, %v3639_v13 }
 0xe06   : > { %v1846_v11 = vpop.f32.mrb[14].mxu1 }
 0xe07   : > { %v4052_v12 = vadd.f32 %v3074_v9, %v1846_v11  ;;  %v3312_v14 = vpop.f32.mrb[15].mxu1 }
 0xe09   : > { %2018 = vrot.lane.b32.xlu1 %v4052_v12, %s3642_s2  ;;  %1851 = vrot.lane.b32.xlu0 %v4052_v12, %s4341_s20  ;;  %s4347_s2 = smov 64   ;;  %s4350_s20 = smov 56  }
 0xe0d   : > { %2016 = vrot.lane.b32.xlu1 %v4052_v12, %s4342_s25  ;;  %2183 = vrot.lane.b32.xlu0 %v4052_v12, %s4343_s26  ;;  %s4352_s25 = smov 16   ;;  %s4353_s26 = smov 24  }
 0xe11   : > { %2185 = vrot.lane.b32.xlu1 %v4052_v12, %s4344_s22  ;;  %2350 = vrot.lane.b32.xlu0 %v4052_v12, %s4345_s28  ;;  %s4354_s22 = sshll.u32 %s3805_s27, 3  ;;  %s615_s28 = sand.u32 1, %s3627_s30  }
 0xe12   : > { %s616_s27 = scalar_lea.vmem [#allocation2], %s615_s28 }
 0xe15   : > { %2352 = vrot.lane.b32.xlu1 %v4052_v12, %s4346_s23 }
 0xe7b   : > { %v2019_v15 = vpop.permute.xlu1 %2018  ;;  %v1852_v16 = vpop.permute.xlu0 %1851 }
 0xe7c   : > { %3314 = vmatpush3.xpose.msk.msra.mxu1 %vm750_vm2, %v1852_v16  ;;  %3324 = vmatpush3.xpose.msk.msra.mxu0 %vm750_vm2, %v2019_v15 }
 0xe7d   : > { %3333 = vmatprep.subr.mxu0 %v3639_v13  ;;  %3318 = vmatprep.subr.mxu1 %v3639_v13 }
 0xe7f   : > { %v2017_v17 = vpop.permute.xlu1 %2016  ;;  %3316 = vmatmul.mubr.msk.f32.vlgmr.msra.gmra.mrb[16].mxu1 %vm750_vm2, %v4052_v12  ;;  %v2184_v19 = vpop.permute.xlu0 %2183 }
 0xe80   : > { %3326 = vmatmul.mubr.msk.f32.vlgmr.msra.gmra.mrb[10].mxu0 %vm750_vm2, %v2017_v17  ;;  %3320 = vmatprep.mubr.msk.f32.mxu1 %vm3638_vm1, %v3639_v13  ;;  %v3088_v17 = vld [vmem:[%s4295_s7 + $0x20] sm:$0xff] }
 0xe81   : > { %3335 = vmatprep.mubr.msk.f32.mxu0 %vm3638_vm1, %v3639_v13 }
 0xe83   : > { %v2186_v18 = vpop.permute.xlu1 %2185  ;;  %v2351_v21 = vpop.permute.xlu0 %2350 }
 0xe84   : > { %3334 = vmatpush3.xpose.msk.msra.mxu0 %vm750_vm2, %v2186_v18  ;;  %v3089_v18 = vld [vmem:[%s4295_s7 + $0x28] sm:$0xff] }
 0xe85   : > { %3343 = vmatprep.subr.mxu0 %v3639_v13 }
 0xe87   : > { %v2353_v20 = vpop.permute.xlu1 %2352  ;;  %3336 = vmatmul.mubr.msk.f32.vlgmr.msra.gmra.mrb[12].mxu0 %vm750_vm2, %v2184_v19  ;;  %v3442_v19 = vpack.c.bf16 %v3089_v18, %v3088_v17 }
 0xe88   : > { %3344 = vmatpush3.xpose.msk.msra.mxu0 %vm750_vm2, %v2353_v20  ;;  %3345 = vmatprep.mubr.msk.f32.mxu0 %vm3638_vm1, %v3639_v13  ;;  %v3090_v20 = vld [vmem:[%s4295_s7 + $0x30] sm:$0xff] }
 0xe89   : > { %3441 = vmatprep.subr.bf16.mxu0 %v3637_v10 }
 0xe8b   : > { %3346 = vmatmul.mubr.msk.f32.vlgmr.msra.gmra.mrb[14].mxu0 %vm750_vm2, %v2351_v21  ;;  %v3091_v21 = vld [vmem:[%s4295_s7 + $0x38] sm:$0xff] }
 0xe8c   : > { %3361 = vmatprep.mubr.msk.f32.mxu0 %vm3638_vm1, %v3639_v13  ;;  %3443 = vmatpush3.bf16.msra.mxu0 %v3442_v19 }
 0xe8d   : > { %3444 = vmatprep.subr.bf16.mxu0 %v3637_v10 }
 0xf52   : > { %v1923_v22 = vpop.f32.mrb[16].mxu1 }
 0xf53   : > { %v1927_v24 = vmul.f32 0.35355338, %v1923_v22  ;;  %v3317_v25 = vpop.f32.mrb[17].mxu1  ;;  %v2090_v27 = vpop.f32.mrb[10].mxu0  ;;  %v3445_v22 = vpack.c.bf16 %v3091_v21, %v3090_v20 }
 0xf54   : > { %v2094_v28 = vmul.f32 0.35355338, %v2090_v27  ;;  %v3327_v29 = vpop.f32.mrb[11].mxu0 }
 0xf55   : > { %v1928_v30 = vadd.f32 %v1927_v24, %v3871_v36  ;;  %3446 = vmatpush3.bf16.msra.mxu0 %v3445_v22 }
 0xf56   : > { %v2095_v31 = vadd.f32 %v2094_v28, %v3871_v36  ;;  %3453 = vmatprep.subr.bf16.mxu0 %v3637_v10 }
 0xf57   : > { %v1929_v32 = vsel %vm750_vm2, %v1928_v30, -inf }
 0xf58   : > { %1930 = vmax.xlane.f32.xlu1 %v1929_v32  ;;  %v2096_v33 = vsel %vm750_vm2, %v2095_v31, -inf }
 0xf59   : > { %2097 = vmax.xlane.f32.xlu0 %v2096_v33 }
 0xf5a   : > { %v2257_v34 = vpop.f32.mrb[12].mxu0 }
 0xf5b   : > { %v2261_v35 = vmul.f32 0.35355338, %v2257_v34  ;;  %v3337_v26 = vpop.f32.mrb[13].mxu0 }
 0xf5d   : > { %v2262_v37 = vadd.f32 %v2261_v35, %v3871_v36 }
 0xf5e   : > { %v2424_v38 = vpop.f32.mrb[14].mxu0 }
 0xf5f   : > { %v2428_v39 = vmul.f32 0.35355338, %v2424_v38  ;;  %v3347_v40 = vpop.f32.mrb[15].mxu0  ;;  %v2263_v41 = vsel %vm750_vm2, %v2262_v37, -inf }
 0xf60   : > { %2264 = vmax.xlane.f32.xlu0 %v2263_v41  ;;  %v3093_v41 = vld [vmem:[%s4296_s8 + $0x1] ss:$0 sm:$0xff] }
 0xf61   : > { %v2429_v42 = vadd.f32 %v2428_v39, %v3871_v36 }
 0xf63   : > { %v2430_v43 = vsel %vm750_vm2, %v2429_v42, -inf }
 0xf64   : > { %2431 = vmax.xlane.f32.xlu0 %v2430_v43 }
 0xf69   : > { %1940 = vrot.lane.b32.xlu1 %v4052_v12, %s4347_s2  ;;  %s4355_s2 = sld [smem:[#allocation11_spill]] }
 0xfe5   : > { %v1931_v44 = vpop.xlane.xlu1 %1930 }
 0xfe6   : > { %v1932_v45 = vsub.f32 %v1928_v30, %v1931_v44  ;;  %v2098_v46 = vpop.xlane.xlu0 %2097 }
 0xfe7   : > { %v2099_v47 = vsub.f32 %v2095_v31, %v2098_v46 }
 0xfe8   : > { %v1933_v48 = vmul.f32 1.442695, %v1932_v45 }
 0xfe9   : > { %v2100_v49 = vmul.f32 1.442695, %v2099_v47  ;;  %v1941_v50 = vpop.permute.xlu1 %1940 }
 0xfea   : > { %3551 = vpow2.f32 %v1933_v48  ;;  %3319 = vmatpush3.msra.mxu1 %v1941_v50 }
 0xfeb   : > { %3553 = vpow2.f32 %v2100_v49  ;;  %3328 = vmatprep.subr.mxu1 %v3639_v13 }
 0xfed   : > { %v2265_v51 = vpop.xlane.xlu0 %2264 }
 0xfee   : > { %v2266_v36 = vsub.f32 %v2262_v37, %v2265_v51 }
 0xff0   : > { %v2267_v52 = vmul.f32 1.442695, %v2266_v36  ;;  %v3099_v36 = vld [vmem:[%s4299_s11 + $0x20] sm:$0xff] }
 0xff1   : > { %v2432_v53 = vpop.xlane.xlu0 %2431 }
 0xff2   : > { %3555 = vpow2.f32 %v2267_v52  ;;  %v2433_v54 = vsub.f32 %v2429_v42, %v2432_v53  ;;  %v3100_v52 = vld [vmem:[%s4299_s11 + $0x28] sm:$0xff] }
 0xff3   : > { %v3448_v53 = vpack.c.bf16 %v3100_v52, %v3099_v36 }
 0xff4   : > { %v3552_v55 = vpop.eup %3551  ;;  %v2434_v56 = vmul.f32 1.442695, %v2433_v54  ;;  %v3102_v54 = vld [vmem:[%s4299_s11 + $0x38] sm:$0xff] }
 0xff5   : > { %v3554_v57 = vpop.eup %3553  ;;  %v1935_v58 = vsel %vm750_vm2, %v3552_v55, 0.0 }
 0xff6   : > { %3557 = vpow2.f32 %v2434_v56  ;;  %1936 = vadd.xlane.f32.xlu1 %v1935_v58  ;;  %v2102_v59 = vsel %vm750_vm2, %v3554_v57, 0.0 }
 0xff7   : > { %2103 = vadd.xlane.f32.xlu0 %v2102_v59 }
 0xffc   : > { %v3556_v60 = vpop.eup %3555 }
 0xffd   : > { %v2269_v61 = vsel %vm750_vm2, %v3556_v60, 0.0 }
 0xffe   : > { %2270 = vadd.xlane.f32.xlu1 %v2269_v61 }
0x1000   : > { %v3558_v63 = vpop.eup %3557 }
0x1001   : > { %v2436_v62 = vsel %vm750_vm2, %v3558_v63, 0.0 }
0x1002   : > { %2437 = vadd.xlane.f32.xlu0 %v2436_v62 }
0x100f   : > { %2274 = vrot.lane.b32.xlu1 %v4052_v12, %s4348_s24  ;;  %s627_s24 = scalar_lea.vmem %s4355_s2, %s4354_s22  ;;  %s2949_s22 = scalar_lea.sflag [#allocation3], %s615_s28 }
0x1010   : > { %v2532_v35 = vld [vmem:[%s627_s24] sm:$0xff]  ;;  %s3122_s24 = sshll.u32 %s3776_s1, 4  ;;  %s3654_s1 = smov [#allocation2]  }
0x1011   : > { %s3577_s2 = sshll.u32 %s3654_s1, 4  ;;  %s3578_s2 = int_to_ptr.vmem [resolvable:$false] %s3577_s2 }
0x1012   : > { %s3579_s4 = scalar_lea.vmem %s3578_s2, 32 }
0x1013   : > { %2441 = vrot.lane.b32.xlu1 %v4052_v12, %s4349_s29  ;;  %s2961_s29 = sshll.u32 %s616_s27, 4  ;;  %s4248_s29 = int_to_ptr.vmem [resolvable:$true] %s2961_s29 }
0x1014   : > { %s3573_s23 = scalar_lea.vmem %s4248_s29, 16  ;;  %p3580_p0 = scmp.lt.s32.totalorder %s4248_s29, %s3578_s2 }
0x1015   : > { %p3574_p11 = scmp.ne.s32.totalorder %s4248_s29, %s3573_s23  ;;  %p3581_p1 = scmp.lt.s32.totalorder %s3579_s4, %s3573_s23 }
0x1017   : > { %p3575_p12 = pnand %p3574_p11, %p3793_p5  ;;  %p3582_p2 = por %p3581_p1, %p3580_p0 }
0x1018   : > { %2107 = vrot.lane.b32.xlu0 %v4052_v12, %s4350_s20  ;;  %s4351_s20 = smov 8  }
0x1019   : > { %p3576_p13 = pneg %p3575_p12 }
0x101b   : > { %p3583_p3 = pnand %p3582_p2, %p3576_p13 }
0x1083   : > { %v1937_v0 = vpop.xlane.xlu1 %1936 }
0x1084   : > { %3559 = vrcp.f32 %v1937_v0  ;;  %v2104_v1 = vpop.xlane.xlu0 %2103 }
0x1085   : > { %3561 = vrcp.f32 %v2104_v1  ;;  %v3106_v1 = vld [vmem:[%s4301_s13 + $0x40] sm:$0xff] }
0x108b   : > { %v2271_v2 = vpop.xlane.xlu1 %2270 }
0x108c   : > { %3563 = vrcp.f32 %v2271_v2  ;;  %v3107_v2 = vld [vmem:[%s4301_s13 + $0x48] sm:$0xff] }
0x108e   : > { %v3560_v3 = vpop.eup %3559 }
0x108f   : > { %v1939_v4 = vmul.f32 %v3560_v3, %v3552_v55  ;;  %v2438_v5 = vpop.xlane.xlu0 %2437  ;;  %v3562_v6 = vpop.eup %3561  ;;  %v3454_v3 = vpack.c.bf16 %v3107_v2, %v3106_v1 }
0x1090   : > { %3565 = vrcp.f32 %v2438_v5  ;;  %v2106_v7 = vmul.f32 %v3562_v6, %v3554_v57  ;;  %v2275_v23 = vpop.permute.xlu1 %2274  ;;  %v3110_v6 = vld [vmem:[%s4301_s13 + $0x60] sm:$0xff] }
0x1091   : > { %3321 = vmatmul.mubr.msk.f32.vlgmr.msra.gmra.mrb[18].mxu1 %vm750_vm2, %v1939_v4  ;;  %v3108_v4 = vld [vmem:[%s4301_s13 + $0x50] sm:$0xff] }
0x1092   : > { %3330 = vmatprep.mubr.msk.f32.mxu1 %vm3638_vm1, %v3639_v13 }
0x1093   : > { %v2108_v9 = vpop.permute.xlu0 %2107 }
0x1094   : > { %3329 = vmatpush3.msra.mxu1 %v2108_v9  ;;  %v2442_v14 = vpop.permute.xlu1 %2441  ;;  %v3112_v9 = vld [vmem:[%s4301_s13 + $0x70] sm:$0xff] }
0x1095   : > { %3331 = vmatmul.mubr.msk.f32.vlgmr.msra.gmra.mrb[20].mxu1 %vm750_vm2, %v2106_v7  ;;  %3338 = vmatprep.subr.mxu1 %v3639_v13  ;;  %v3111_v7 = vld [vmem:[%s4301_s13 + $0x68] sm:$0xff] }
0x1096   : > { %v3564_v11 = vpop.eup %3563  ;;  %3339 = vmatpush3.msra.mxu1 %v2275_v23  ;;  %3340 = vmatprep.mubr.msk.f32.mxu1 %vm3638_vm1, %v3639_v13  ;;  %v3460_v23 = vpack.c.bf16 %v3111_v7, %v3110_v6 }
0x1097   : > { %v2273_v12 = vmul.f32 %v3564_v11, %v3556_v60  ;;  %3348 = vmatprep.subr.mxu1 %v3639_v13  ;;  %v3097_v60 = vld [vmem:[%s4297_s9 + $0x1] ss:$0 sm:$0xff]  ;;  %v3113_v11 = vld [vmem:[%s4301_s13 + $0x78] sm:$0xff] }
0x1099   : > { %3341 = vmatmul.mubr.msk.f32.vlgmr.msra.gmra.mrb[22].mxu1 %vm750_vm2, %v2273_v12  ;;  %v3463_v12 = vpack.c.bf16 %v3113_v11, %v3112_v9 }
0x109a   : > { %v3566_v15 = vpop.eup %3565  ;;  %3349 = vmatpush3.msra.mxu1 %v2442_v14  ;;  %3350 = vmatprep.mubr.msk.f32.mxu1 %vm3638_vm1, %v3639_v13  ;;  %v3104_v14 = vld [vmem:[%s4300_s12 + $0x1] ss:$0 sm:$0xff] }
0x109b   : > { %v2440_v16 = vmul.f32 %v3566_v15, %v3558_v63  ;;  %3447 = vmatprep.subr.bf16.mxu1 %v3637_v10  ;;  %v3098_v63 = vld [vmem:[%s4298_s10 + $0x1] ss:$0 sm:$0xff] }
0x109d   : > { %3351 = vmatmul.mubr.msk.f32.vlgmr.msra.gmra.mrb[24].mxu1 %vm750_vm2, %v2440_v16 }
0x109e   : > { %3372 = vmatprep.mubr.msk.f32.mxu1 %vm3638_vm1, %v3639_v13  ;;  %3449 = vmatpush3.bf16.msra.mxu1 %v3448_v53  ;;  %v2873_v53 = vld [vmem:[%s4306_s18] sm:$0x1] }
0x109f   : > { %3450 = vmatprep.subr.bf16.mxu1 %v3637_v10 }
0x1164   : > { %v2012_v24 = vpop.f32.mrb[18].mxu1 }
0x1165   : > { %v3322_v25 = vpop.f32.mrb[19].mxu1 }
0x1168   : > { %v2179_v27 = vpop.f32.mrb[20].mxu1 }
0x1169   : > { %2518 = vrot.lane.b32.xlu1 %v2179_v27, %s4351_s20  ;;  %v3332_v28 = vpop.f32.mrb[21].mxu1 }
0x116c   : > { %v2346_v29 = vpop.f32.mrb[22].mxu1 }
0x116d   : > { %2522 = vrot.lane.b32.xlu0 %v2346_v29, %s4352_s25  ;;  %v3342_v30 = vpop.f32.mrb[23].mxu1  ;;  %v3115_v29 = vld [vmem:[%s4302_s14 + $0x1] ss:$0 sm:$0xff] }
0x1170   : > { %v2513_v31 = vpop.f32.mrb[24].mxu1 }
0x1171   : > { %2526 = vrot.lane.b32.xlu1 %v2513_v31, %s4353_s26  ;;  %v3352_v32 = vpop.f32.mrb[25].mxu1  ;;  %s4246_s26 = scalar_lea.hbm %s4307_s19, %s3122_s24 }
0x11db   : > { %v2519_v33 = vpop.permute.xlu1 %2518 }
0x11dc   : > { %v2529_v26 = vsel %vm750_vm2, %v2012_v24, %v2519_v33 }
0x11df   : > { %v2523_v34 = vpop.permute.xlu0 %2522 }
0x11e0   : > { %v2530_v37 = vsel %vm1434_vm3, %v2529_v26, %v2523_v34 }
0x11e3   : > { %v2527_v38 = vpop.permute.xlu1 %2526 }
0x11e4   : > { %v2531_v39 = vsel %vm1436_vm4, %v2530_v37, %v2527_v38 }
0x11e5   : > { %v2533_v40 = vadd.f32 %v2532_v35, %v2531_v39 }
0x11e7   : > { %3362 = vmatmul.mubr.msk.f32.vlgmr.msra.gmra.mrb[16].mxu0 %vm631_vm0, %v2533_v40  ;;  %v2869_v40 = vld [vmem:[%s4305_s17] sm:$0xff] }
0x11e8   : > { %3391 = vmatprep.mubr.msk.f32.mxu0 %vm3638_vm1, %v3639_v13  ;;  %3455 = vmatpush3.bf16.msra.mxu0 %v3454_v3 }
0x11e9   : > { %3456 = vmatprep.subr.bf16.mxu0 %v3637_v10 }
0x12ba   : > { %v2616_v42 = vpop.f32.mrb[16].mxu0 }
0x12bb   : > { %v2617_v43 = vadd.f32 %v3093_v41, %v2616_v42  ;;  %v3363_v44 = vpop.f32.mrb[17].mxu0  ;;  %v2870_v41 = vld [vmem:[%s4305_s17 + $0x8] sm:$0xff] }
0x12bc   : > { %v3466_v42 = vpack.c.bf16 %v2870_v41, %v2869_v40  ;;  %v2872_v44 = vld [vmem:[%s4305_s17 + $0x18] sm:$0xff] }
0x12bd   : > { %v2620_v45 = vadd.f32 %v2617_v43, %v4043_v8  ;;  %v3101_v8 = vld [vmem:[%s4299_s11 + $0x30] sm:$0xff] }
0x12be   : > { %v3451_v55 = vpack.c.bf16 %v3102_v54, %v3101_v8  ;;  %v2871_v43 = vld [vmem:[%s4305_s17 + $0x10] sm:$0xff] }
0x12bf   : > { %v2625_v46 = vsel %vm631_vm0, %v2620_v45, 0.0 }
0x12c0   : > { %2626 = vadd.xlane.f32.xlu0 %v2625_v46  ;;  %3452 = vmatpush3.bf16.msra.mxu1 %v3451_v55 }
0x12c1   : > { %3465 = vmatprep.subr.bf16.mxu1 %v3637_v10 }
0x134d   : > { %v2627_v47 = vpop.xlane.xlu0 %2626 }
0x134e   : > { %v2628_v48 = vmul.f32 0.03125, %v2627_v47 }
0x1350   : > { %v2629_v49 = vsub.f32 %v2620_v45, %v2628_v48  ;;  %v3469_v45 = vpack.c.bf16 %v2872_v44, %v2871_v43 }
0x1352   : > { %v2630_v50 = vmul.f32 %v2629_v49, %v2629_v49 }
0x1354   : > { %v2631_v51 = vsel %vm631_vm0, %v2630_v50, 0.0 }
0x1355   : > { %2632 = vadd.xlane.f32.xlu1 %v2631_v51  ;;  %v3120_v51 = vld [vmem:[%s4304_s16 + $0x1] ss:$0 sm:$0xff] }
0x13e2   : > { %v2633_v56 = vpop.xlane.xlu1 %2632 }
0x13e3   : > { %v2634_v57 = vmul.f32 0.03125, %v2633_v56 }
0x13e5   : > { %v2635_v58 = vadd.f32 1e-12, %v2634_v57 }
0x13e7   : > { %3567 = vrsqrt.f32 %v2635_v58 }
0x13f1   : > { %v3568_v59 = vpop.eup %3567 }
0x13f2   : > { %v2637_v61 = vmul.f32 %v3568_v59, %v2629_v49 }
0x13f4   : > { %v2644_v62 = vmul.f32 %v3097_v60, %v2637_v61 }
0x13f6   : > { %v2651_v0 = vadd.f32 %v3098_v63, %v2644_v62 }
0x13f8   : > { %3373 = vmatmul.mubr.msk.f32.vlgmr.msra.gmra.mrb[26].mxu1 %vm631_vm0, %v2651_v0 }
0x13f9   : > { %3402 = vmatprep.mubr.msk.f32.mxu1 %vm3638_vm1, %v3639_v13  ;;  %v3109_v13 = vld [vmem:[%s4301_s13 + $0x58] sm:$0xff]  ;;  %3467 = vmatpush3.bf16.msra.mxu1 %v3466_v42 }
0x13fa   : > { %v3457_v5 = vpack.c.bf16 %v3109_v13, %v3108_v4  ;;  %3468 = vmatprep.subr.bf16.mxu1 %v3637_v10 }
0x13fc   : > { %3458 = vmatpush3.bf16.msra.mxu0 %v3457_v5 }
0x13fd   : > { %3459 = vmatprep.subr.bf16.mxu0 %v3637_v10  ;;  %3470 = vmatpush3.bf16.msra.mxu1 %v3469_v45 }
0x1400   : > { %3461 = vmatpush3.bf16.msra.mxu0 %v3460_v23 }
0x1401   : > { %3462 = vmatprep.subr.bf16.mxu0 %v3637_v10  ;;  %v3119_v10 = vld [vmem:[%s4303_s15 + $0x1] ss:$0 sm:$0xff] }
0x1404   : > { %3464 = vmatpush3.bf16.msra.mxu0 %v3463_v12 }
0x14cb   : > { %v2734_v15 = vpop.f32.mrb[26].mxu1 }
0x14cc   : > { %v2735_v16 = vadd.f32 %v3104_v14, %v2734_v15  ;;  %v3374_v17 = vpop.f32.mrb[27].mxu1 }
0x14ce   : > { %v2738_v18 = vmul.f32 %v2735_v16, %v2735_v16 }
0x14d0   : > { %v2739_v19 = vmul.f32 %v2738_v18, %v2735_v16 }
0x14d2   : > { %v2740_v20 = vmul.f32 0.044715, %v2739_v19 }
0x14d4   : > { %v2741_v21 = vadd.f32 %v2740_v20, %v2735_v16 }
0x14d6   : > { %v2742_v22 = vmul.f32 0.7978846, %v2741_v21 }
0x14d8   : > { %3569 = vtanh.f32 %v2742_v22 }
0x14e2   : > { %v3570_v24 = vpop.eup %3569 }
0x14e3   : > { %v2744_v25 = vadd.f32 1.0, %v3570_v24 }
0x14e5   : > { %v2745_v27 = vmul.f32 0.5, %v2744_v25 }
0x14e7   : > { %v2746_v28 = vmul.f32 %v2745_v27, %v2735_v16 }
0x14e9   : > { %3392 = vmatmul.mubr.msk.f32.vlgmr.msra.gmra.mrb[18].mxu0 %vm1660_vm5, %v2746_v28 }
0x15bc   : > { %v2833_v30 = vpop.f32.mrb[18].mxu0 }
0x15bd   : > { %v2834_v31 = vadd.f32 %v3115_v29, %v2833_v30  ;;  %v3393_v32 = vpop.f32.mrb[19].mxu0 }
0x15bf   : > { %v2837_v33 = vadd.f32 %v2834_v31, %v2651_v0 }
0x15c1   : > { %v2842_v34 = vsel %vm631_vm0, %v2837_v33, 0.0 }
0x15c2   : > { %2843 = vadd.xlane.f32.xlu0 %v2842_v34 }
0x164f   : > { %v2844_v35 = vpop.xlane.xlu0 %2843 }
0x1650   : > { %v2845_v26 = vmul.f32 0.03125, %v2844_v35 }
0x1652   : > { %v2846_v37 = vsub.f32 %v2837_v33, %v2845_v26 }
0x1654   : > { %v2847_v38 = vmul.f32 %v2846_v37, %v2846_v37 }
0x1656   : > { %v2848_v39 = vsel %vm631_vm0, %v2847_v38, 0.0 }
0x1657   : > { %2849 = vadd.xlane.f32.xlu0 %v2848_v39 }
0x16e4   : > { %v2850_v46 = vpop.xlane.xlu0 %2849 }
0x16e5   : > { %v2851_v47 = vmul.f32 0.03125, %v2850_v46 }
0x16e7   : > { %v2852_v48 = vadd.f32 1e-12, %v2851_v47 }
0x16e9   : > { %3571 = vrsqrt.f32 %v2852_v48 }
0x16f3   : > { %v3572_v49 = vpop.eup %3571 }
0x16f4   : > { %v2854_v50 = vmul.f32 %v3572_v49, %v2846_v37 }
0x16f6   : > { %v2861_v36 = vmul.f32 %v3119_v10, %v2854_v50 }
0x16f8   : > { %v2868_v52 = vadd.f32 %v3120_v51, %v2861_v36 }
0x16fa   : > { %3403 = vmatmul.mubr.msk.f32.vlgmr.msra.gmra.mrb[28].mxu1 %vm631_vm0, %v2868_v52 }
0x17cd   : > { %v2943_v8 = vpop.f32.mrb[28].mxu1 }
0x17ce   : > { %v2944_v54 = vadd.f32 %v2943_v8, %v2873_v53  ;;  %v3404_v55 = vpop.f32.mrb[29].mxu1 }
0x17d0   : > { %2947 = vst [vmem:[%s616_s27] sm:$0x1] %v2944_v54 }
0x17d1   : > { %3586 = shalt.err (!%p3583_p3)
}
0x17d2   : > { %s3587_s28 = scalar_lea.hbm %s4246_s26, 16  ;;  %s3591_s20 = scalar_lea.hbm %s4307_s19, 32 }
0x17d3   : > { %p3588_p4 = scmp.ne.s32.totalorder %s4246_s26, %s3587_s28  ;;  %p3592_p9 = scmp.lt.u32.totalorder %s4246_s26, %s4307_s19 }
0x17d4   : > { %p3593_p10 = scmp.lt.u32.totalorder %s3591_s20, %s3587_s28  ;;  %p3595_p12 = scmp.lt.u32.totalorder %s3587_s28, %s4246_s26 }
0x17d5   : > { %p3589_p7 = pnand %p3588_p4, %p3793_p5 }
0x17d6   : > { %p3594_p11 = por %p3593_p10, %p3592_p9 }
0x17d7   : > { %p3590_p8 = pneg %p3589_p7 }
0x17d8   : > { %p3596_p13 = por %p3595_p12, %p3594_p11 }
0x17da   : > { %p3597_p0 = pnand %p3596_p13, %p3590_p8 }
0x17dc   : > { %3600 = shalt.err (!%p3597_p0)
}
0x17dd   : > { %3471 = dma.vmem_to_hbm [thread:$0]  (%p3793_p5), %s4248_s29, 16, %s4246_s26, %s2949_s22  }
0x17de PF: > { %p3477_p1 = scmp.ge.s32.totalorder %s3635_s21, 2  ;;  %s2973_s23 = sand.u32 1, %s3623_s0  }
0x17df   : > { %s2974_s2 = scalar_lea.sflag [#allocation3], %s2973_s23 }
0x17e0   : > { %p3474_p2 = pnand %p3477_p1, %p3797_p6 }
0x17e2   : > { %3618 = dma.done.wait (!%p3474_p2), %s2974_s2, 16  }
0x17e3   : > { %3620 = vsyncadd (!%p3474_p2), %s2974_s2, 4294967280  ;;  %s4357_s21 = sld [smem:[#allocation6_spill]]  ;;  %s4358_s28 = sld [smem:[#allocation5_spill]] }
0x17e4   : > { %s4359_s20 = sld [smem:[#allocation7_spill]]  ;;  %s4360_s0 = smov %s3627_s30 }
0x17e9   : > { %p29_p3 = scmp.ge.s32.totalorder %s4357_s21, 4   ;;  %s4361_s30 = smov %s4358_s28 }
0x17eb   :  { %31 = sbr.rel (!%p29_p3) target bundleno = 9 (0x9), region = 149 }
0x17f2   :  { %2978 = vsyncpa [#allocation3], 1 }
0x17f3   :  { %2980 = vsyncpa [#allocation3 + $0x1], 1 }

</bundles_post_ra>
